<compile_context>
chip_gen: v6e
topology: v6e:2x2x1
jax: 0.10.0
libtpu: 0.0.40
codegen_flags: <defaults>
</compile_context>

<pallas_src>
import functools

import jax
import jax.numpy as jnp
from jax.experimental import pallas as pl
from jax.experimental.pallas import tpu as pltpu

CONV_KS = 5          # nn.Conv2d(channels, 16, kernel_size=5, padding='same')
BATCH_BLOCK = 1      # images per grid step; raise (e.g. 8) for large batches


# ---------------------------------------------------------------------------
# Fused kernel: conv (single banded matmul) + bias + LeakyReLU + FC
# ---------------------------------------------------------------------------
def _encoder_kernel(xband_ref, wconv_ref, cbias_ref, wfc_ref, fbias_ref,
                    out_ref, act_ref):
    # xband : [NB*H, KH*Wp*C] bf16  h-band-stacked padded input rows
    # wconv : [KH*Wp*C, W*OC] bf16  merged banded conv weight
    # cbias : [1, W*OC]       f32   conv bias tiled over w
    # wfc   : [H*W*OC, FP]    bf16  FC weight (NCHW flatten folded, F padded)
    # fbias : [1, FP]         f32
    # out   : [NB, 1, FP]     f32
    # act   : [NB, H*W*OC]    f32   VMEM scratch (lane-contiguous FC operand)
    NB = out_ref.shape[0]
    WO = wconv_ref.shape[1]
    H = xband_ref.shape[0] // NB

    # ---- conv: ONE matmul (implicit im2col over kh), f32 accumulation -------
    acc = jnp.dot(xband_ref[...], wconv_ref[...],
                  preferred_element_type=jnp.float32)

    # ---- bias + LeakyReLU(0.01), f32 epilogue (v5e-friendly) ----------------
    acc = acc + cbias_ref[...]
    act = jnp.where(acc >= 0.0, acc, 0.01 * acc)

    # ---- gather valid rows -> lane-contiguous [NB, H*WO] FC operand ---------
    for n in range(NB):                                   # static, unrolled
        for h in range(H):
            r = n * H + h
            act_ref[pl.ds(n, 1), pl.ds(h * WO, WO)] = act[r:r + 1, :]

    # ---- FC: ONE matmul + single lane-dense store per step ------------------
    lhs = act_ref[...].astype(wfc_ref.dtype)              # single bf16 cast
    res = jnp.dot(lhs, wfc_ref[...],
                  preferred_element_type=jnp.float32) + fbias_ref[...]
    out_ref[...] = res.reshape(out_ref.shape).astype(out_ref.dtype)


# ---------------------------------------------------------------------------
# Weight-side re-layouts: run ONCE per weight set (NOT per forward call)
# ---------------------------------------------------------------------------
def prepare_encoder_params(conv_w, conv_b, fc_w, fc_b, input_dim):
    OC, C, KH, KW = conv_w.shape
    F = fc_w.shape[0]
    H = W = input_dim
    Wp = W + KW - 1                     # 'same' padding, stride 1
    WO = W * OC
    FP = max(128, -(-F // 128) * 128)   # pad FC output lanes to 128 multiple

    # Merged banded conv weight:
    #   wconv[kh*Wp*C + jp*C + c, w*OC + oc] = conv_w[oc, c, kh, jp - w]
    wk = jnp.transpose(conv_w, (2, 3, 1, 0)).reshape(KH, KW * C, OC)
    cols = [jnp.pad(wk, ((0, 0), (w * C, (W - 1 - w) * C), (0, 0)))
            for w in range(W)]
    wconv = jnp.stack(cols, axis=2).reshape(KH * Wp * C, WO).astype(jnp.bfloat16)

    # conv bias tiled over w: cbias[0, w*OC + oc] = conv_b[oc]
    cbias = jnp.tile(conv_b, (W,)).reshape(1, WO).astype(jnp.float32)

    # FC weight permuted so it consumes NHWC-flattened conv activations
    # (folds PyTorch's NCHW x.view(-1, 16*H*W)); output lanes zero-padded.
    wfc = jnp.transpose(fc_w.reshape(F, OC, H, W), (2, 3, 1, 0)).reshape(H * WO, F)
    wfc = jnp.pad(wfc, ((0, 0), (0, FP - F))).astype(jnp.bfloat16)
    fbias = jnp.pad(fc_b, (0, FP - F)).reshape(1, FP).astype(jnp.float32)
    return wconv, cbias, wfc, fbias


# ---------------------------------------------------------------------------
# Forward: tiny activation prep + single pallas_call
# ---------------------------------------------------------------------------
@functools.partial(jax.jit, static_argnames=("f_out",))
def encoder_forward(x, wconv, cbias, wfc, fbias, *, f_out):
    N, C, H, W = x.shape
    KH = CONV_KS
    pad = (KH - 1) // 2
    Hp = H + 2 * pad
    KC = wconv.shape[0]                 # KH * (W + 2*pad) * C
    WO = wconv.shape[1]                 # W * 16
    FP = wfc.shape[1]
    NB = BATCH_BLOCK
    assert N % NB == 0

    # Per-call activation prep (tiny): pad, NCHW->NHWC, stack the KH shifted
    # row bands so the conv is a single matmul with K = KH*Wp*C in-kernel.
    xp = jnp.pad(x, ((0, 0), (0, 0), (pad, pad), (pad, pad)))
    xr = jnp.transpose(xp, (0, 2, 3, 1)).reshape(N, Hp, -1)
    xband = jnp.concatenate([xr[:, d:d + H, :] for d in range(KH)], axis=-1)
    xband = xband.reshape(N * H, KC).astype(jnp.bfloat16)

    flops = 2 * N * H * KC * WO + 2 * N * (H * WO) * FP
    bytes_accessed = ((xband.size + wconv.size + wfc.size) * 2
                      + (WO + FP + N * FP) * 4)

    out = pl.pallas_call(
        _encoder_kernel,
        out_shape=jax.ShapeDtypeStruct((N, 1, FP), jnp.float32),
        grid=(N // NB,),
        in_specs=[
            pl.BlockSpec((NB * H, KC), lambda i: (i, 0)),
            pl.BlockSpec((KC, WO), lambda i: (0, 0)),
            pl.BlockSpec((1, WO), lambda i: (0, 0)),
            pl.BlockSpec((H * WO, FP), lambda i: (0, 0)),
            pl.BlockSpec((1, FP), lambda i: (0, 0)),
        ],
        out_specs=pl.BlockSpec((NB, 1, FP), lambda i: (i, 0, 0)),
        scratch_shapes=[pltpu.VMEM((NB, H * WO), jnp.float32)],
        compiler_params=pltpu.CompilerParams(
            dimension_semantics=("parallel",)),
        cost_estimate=pl.CostEstimate(
            flops=flops, transcendentals=0, bytes_accessed=bytes_accessed),
    )(xband, wconv, cbias, wfc, fbias)
    return out.reshape(N, FP)[:, :f_out]


# ---------------------------------------------------------------------------
# Main
# ---------------------------------------------------------------------------
if __name__ == "__main__":
    batch = 2
    channels = 4
    input_dim = 16          # H == W == input_dim
    latent_dim = 8

    key = jax.random.PRNGKey(0)
    k_x, k_cw, k_cb, k_fw, k_fb = jax.random.split(key, 5)

    x = jax.random.normal(k_x, (batch, channels, input_dim, input_dim),
                          dtype=jnp.float32)

    fan_in_conv = channels * 5 * 5
    bc_lim = 1.0 / jnp.sqrt(jnp.float32(fan_in_conv))
    conv_w = jax.random.uniform(k_cw, (16, channels, 5, 5),
                                minval=-bc_lim, maxval=bc_lim,
                                dtype=jnp.float32)
    conv_b = jax.random.uniform(k_cb, (16,),
                                minval=-bc_lim, maxval=bc_lim,
                                dtype=jnp.float32)

    fan_in_fc = 16 * input_dim * input_dim
    bf_lim = 1.0 / jnp.sqrt(jnp.float32(fan_in_fc))
    fc_w = jax.random.uniform(k_fw, (2 * latent_dim, fan_in_fc),
                              minval=-bf_lim, maxval=bf_lim,
                              dtype=jnp.float32)
    fc_b = jax.random.uniform(k_fb, (2 * latent_dim,),
                              minval=-bf_lim, maxval=bf_lim,
                              dtype=jnp.float32)

    # Weight re-layouts once (hoisted out of the per-forward path).
    params = prepare_encoder_params(conv_w, conv_b, fc_w, fc_b, input_dim)
    params = tuple(jax.block_until_ready(p) for p in params)

    out = jax.block_until_ready(
        encoder_forward(x, *params, f_out=2 * latent_dim))
    assert out.shape == (batch, 2 * latent_dim), out.shape

    # Pure-JAX f32 reference (no Pallas).  bf16 MXU operands => loosened tol.
    ref_conv = jax.lax.conv_general_dilated(
        x, conv_w, window_strides=(1, 1), padding="SAME",
        dimension_numbers=("NCHW", "OIHW", "NCHW")) + conv_b[None, :, None, None]
    ref_act = jnp.where(ref_conv >= 0.0, ref_conv, 0.01 * ref_conv)
    ref_out = ref_act.reshape(batch, -1) @ fc_w.T + fc_b
    max_err = float(jnp.max(jnp.abs(out - ref_out)))
    assert jnp.allclose(out, ref_out, atol=2e-2, rtol=2e-2), max_err

    print("KERNEL_OK")
</pallas_src>

<mosaic_0001>
module attributes {stable_mosaic.version = 11 : i64} {
  func.func @_encoder_kernel(%arg0: i32, %arg1: memref<16x400xbf16, #tpu.memory_space<vmem>>, %arg2: memref<400x256xbf16, #tpu.memory_space<vmem>>, %arg3: memref<1x256xf32, #tpu.memory_space<vmem>>, %arg4: memref<4096x128xbf16, #tpu.memory_space<vmem>>, %arg5: memref<1x128xf32, #tpu.memory_space<vmem>>, %arg6: memref<1x1x128xf32, #tpu.memory_space<vmem>>, %arg7: memref<1x4096xf32, #tpu.memory_space<vmem>>) attributes {dimension_semantics = [#tpu.dimension_semantics<parallel>], iteration_bounds = array<i64: 2>, scalar_prefetch = 0 : i64, scratch_operands = 1 : i64, tpu.core_type = #tpu.core_type<tc>, window_params = [{transform_indices = @transform_0, window_bounds = array<i64: 16, 400>}, {pipeline_mode = #tpu.pipeline_mode<synchronous>, transform_indices = @transform_1, window_bounds = array<i64: 400, 256>}, {pipeline_mode = #tpu.pipeline_mode<synchronous>, transform_indices = @transform_2, window_bounds = array<i64: 1, 256>}, {pipeline_mode = #tpu.pipeline_mode<synchronous>, transform_indices = @transform_3, window_bounds = array<i64: 4096, 128>}, {pipeline_mode = #tpu.pipeline_mode<synchronous>, transform_indices = @transform_4, window_bounds = array<i64: 1, 128>}, {transform_indices = @transform_5, window_bounds = array<i64: 1, 1, 128>}]} {
    %c0 = arith.constant 0 : index
    %c0_0 = arith.constant 0 : index
    %0 = vector.load %arg1[%c0, %c0_0] : memref<16x400xbf16, #tpu.memory_space<vmem>>, vector<16x400xbf16>
    %c0_1 = arith.constant 0 : index
    %c0_2 = arith.constant 0 : index
    %1 = vector.load %arg2[%c0_1, %c0_2] : memref<400x256xbf16, #tpu.memory_space<vmem>>, vector<400x256xbf16>
    %cst = arith.constant dense<0.000000e+00> : vector<16x256xf32>
    %2 = tpu.matmul %0, %1, %cst {dimension_numbers = #tpu.dot_dimension_numbers<[1], [0], [0], [1], [0, 0, 1, 1], [], []>} : vector<16x400xbf16>, vector<400x256xbf16>, vector<16x256xf32> -> vector<16x256xf32>
    %c0_3 = arith.constant 0 : index
    %c0_4 = arith.constant 0 : index
    %3 = vector.load %arg3[%c0_3, %c0_4] : memref<1x256xf32, #tpu.memory_space<vmem>>, vector<1x256xf32>
    %4 = vector.broadcast %3 : vector<1x256xf32> to vector<16x256xf32>
    %5 = arith.addf %2, %4 : vector<16x256xf32>
    %cst_5 = arith.constant 0.000000e+00 : f32
    %6 = vector.broadcast %cst_5 : f32 to vector<16x256xf32>
    %7 = arith.cmpf oge, %5, %6 : vector<16x256xf32>
    %cst_6 = arith.constant 0.00999999977 : f32
    %8 = vector.broadcast %cst_6 : f32 to vector<16x256xf32>
    %9 = arith.mulf %8, %5 : vector<16x256xf32>
    %10 = arith.select %7, %5, %9 : vector<16x256xi1>, vector<16x256xf32>
    %11 = vector.extract_strided_slice %10 {offsets = [0, 0], sizes = [1, 256], strides = [1, 1]} : vector<16x256xf32> to vector<1x256xf32>
    %c0_7 = arith.constant 0 : index
    %c0_8 = arith.constant 0 : index
    %12 = vector.load %arg7[%c0_7, %c0_8] : memref<1x4096xf32, #tpu.memory_space<vmem>>, vector<1x256xf32>
    tpu.vector_store %arg7[%c0_7, %c0_8], %11 {strides = array<i32>} : memref<1x4096xf32, #tpu.memory_space<vmem>>, vector<1x256xf32>,
    %13 = vector.extract_strided_slice %10 {offsets = [1, 0], sizes = [1, 256], strides = [1, 1]} : vector<16x256xf32> to vector<1x256xf32>
    %c0_9 = arith.constant 0 : index
    %c256 = arith.constant 256 : index
    %14 = vector.load %arg7[%c0_9, %c256] : memref<1x4096xf32, #tpu.memory_space<vmem>>, vector<1x256xf32>
    tpu.vector_store %arg7[%c0_9, %c256], %13 {strides = array<i32>} : memref<1x4096xf32, #tpu.memory_space<vmem>>, vector<1x256xf32>,
    %15 = vector.extract_strided_slice %10 {offsets = [2, 0], sizes = [1, 256], strides = [1, 1]} : vector<16x256xf32> to vector<1x256xf32>
    %c0_10 = arith.constant 0 : index
    %c512 = arith.constant 512 : index
    %16 = vector.load %arg7[%c0_10, %c512] : memref<1x4096xf32, #tpu.memory_space<vmem>>, vector<1x256xf32>
    tpu.vector_store %arg7[%c0_10, %c512], %15 {strides = array<i32>} : memref<1x4096xf32, #tpu.memory_space<vmem>>, vector<1x256xf32>,
    %17 = vector.extract_strided_slice %10 {offsets = [3, 0], sizes = [1, 256], strides = [1, 1]} : vector<16x256xf32> to vector<1x256xf32>
    %c0_11 = arith.constant 0 : index
    %c768 = arith.constant 768 : index
    %18 = vector.load %arg7[%c0_11, %c768] : memref<1x4096xf32, #tpu.memory_space<vmem>>, vector<1x256xf32>
    tpu.vector_store %arg7[%c0_11, %c768], %17 {strides = array<i32>} : memref<1x4096xf32, #tpu.memory_space<vmem>>, vector<1x256xf32>,
    %19 = vector.extract_strided_slice %10 {offsets = [4, 0], sizes = [1, 256], strides = [1, 1]} : vector<16x256xf32> to vector<1x256xf32>
    %c0_12 = arith.constant 0 : index
    %c1024 = arith.constant 1024 : index
    %20 = vector.load %arg7[%c0_12, %c1024] : memref<1x4096xf32, #tpu.memory_space<vmem>>, vector<1x256xf32>
    tpu.vector_store %arg7[%c0_12, %c1024], %19 {strides = array<i32>} : memref<1x4096xf32, #tpu.memory_space<vmem>>, vector<1x256xf32>,
    %21 = vector.extract_strided_slice %10 {offsets = [5, 0], sizes = [1, 256], strides = [1, 1]} : vector<16x256xf32> to vector<1x256xf32>
    %c0_13 = arith.constant 0 : index
    %c1280 = arith.constant 1280 : index
    %22 = vector.load %arg7[%c0_13, %c1280] : memref<1x4096xf32, #tpu.memory_space<vmem>>, vector<1x256xf32>
    tpu.vector_store %arg7[%c0_13, %c1280], %21 {strides = array<i32>} : memref<1x4096xf32, #tpu.memory_space<vmem>>, vector<1x256xf32>,
    %23 = vector.extract_strided_slice %10 {offsets = [6, 0], sizes = [1, 256], strides = [1, 1]} : vector<16x256xf32> to vector<1x256xf32>
    %c0_14 = arith.constant 0 : index
    %c1536 = arith.constant 1536 : index
    %24 = vector.load %arg7[%c0_14, %c1536] : memref<1x4096xf32, #tpu.memory_space<vmem>>, vector<1x256xf32>
    tpu.vector_store %arg7[%c0_14, %c1536], %23 {strides = array<i32>} : memref<1x4096xf32, #tpu.memory_space<vmem>>, vector<1x256xf32>,
    %25 = vector.extract_strided_slice %10 {offsets = [7, 0], sizes = [1, 256], strides = [1, 1]} : vector<16x256xf32> to vector<1x256xf32>
    %c0_15 = arith.constant 0 : index
    %c1792 = arith.constant 1792 : index
    %26 = vector.load %arg7[%c0_15, %c1792] : memref<1x4096xf32, #tpu.memory_space<vmem>>, vector<1x256xf32>
    tpu.vector_store %arg7[%c0_15, %c1792], %25 {strides = array<i32>} : memref<1x4096xf32, #tpu.memory_space<vmem>>, vector<1x256xf32>,
    %27 = vector.extract_strided_slice %10 {offsets = [8, 0], sizes = [1, 256], strides = [1, 1]} : vector<16x256xf32> to vector<1x256xf32>
    %c0_16 = arith.constant 0 : index
    %c2048 = arith.constant 2048 : index
    %28 = vector.load %arg7[%c0_16, %c2048] : memref<1x4096xf32, #tpu.memory_space<vmem>>, vector<1x256xf32>
    tpu.vector_store %arg7[%c0_16, %c2048], %27 {strides = array<i32>} : memref<1x4096xf32, #tpu.memory_space<vmem>>, vector<1x256xf32>,
    %29 = vector.extract_strided_slice %10 {offsets = [9, 0], sizes = [1, 256], strides = [1, 1]} : vector<16x256xf32> to vector<1x256xf32>
    %c0_17 = arith.constant 0 : index
    %c2304 = arith.constant 2304 : index
    %30 = vector.load %arg7[%c0_17, %c2304] : memref<1x4096xf32, #tpu.memory_space<vmem>>, vector<1x256xf32>
    tpu.vector_store %arg7[%c0_17, %c2304], %29 {strides = array<i32>} : memref<1x4096xf32, #tpu.memory_space<vmem>>, vector<1x256xf32>,
    %31 = vector.extract_strided_slice %10 {offsets = [10, 0], sizes = [1, 256], strides = [1, 1]} : vector<16x256xf32> to vector<1x256xf32>
    %c0_18 = arith.constant 0 : index
    %c2560 = arith.constant 2560 : index
    %32 = vector.load %arg7[%c0_18, %c2560] : memref<1x4096xf32, #tpu.memory_space<vmem>>, vector<1x256xf32>
    tpu.vector_store %arg7[%c0_18, %c2560], %31 {strides = array<i32>} : memref<1x4096xf32, #tpu.memory_space<vmem>>, vector<1x256xf32>,
    %33 = vector.extract_strided_slice %10 {offsets = [11, 0], sizes = [1, 256], strides = [1, 1]} : vector<16x256xf32> to vector<1x256xf32>
    %c0_19 = arith.constant 0 : index
    %c2816 = arith.constant 2816 : index
    %34 = vector.load %arg7[%c0_19, %c2816] : memref<1x4096xf32, #tpu.memory_space<vmem>>, vector<1x256xf32>
    tpu.vector_store %arg7[%c0_19, %c2816], %33 {strides = array<i32>} : memref<1x4096xf32, #tpu.memory_space<vmem>>, vector<1x256xf32>,
    %35 = vector.extract_strided_slice %10 {offsets = [12, 0], sizes = [1, 256], strides = [1, 1]} : vector<16x256xf32> to vector<1x256xf32>
    %c0_20 = arith.constant 0 : index
    %c3072 = arith.constant 3072 : index
    %36 = vector.load %arg7[%c0_20, %c3072] : memref<1x4096xf32, #tpu.memory_space<vmem>>, vector<1x256xf32>
    tpu.vector_store %arg7[%c0_20, %c3072], %35 {strides = array<i32>} : memref<1x4096xf32, #tpu.memory_space<vmem>>, vector<1x256xf32>,
    %37 = vector.extract_strided_slice %10 {offsets = [13, 0], sizes = [1, 256], strides = [1, 1]} : vector<16x256xf32> to vector<1x256xf32>
    %c0_21 = arith.constant 0 : index
    %c3328 = arith.constant 3328 : index
    %38 = vector.load %arg7[%c0_21, %c3328] : memref<1x4096xf32, #tpu.memory_space<vmem>>, vector<1x256xf32>
    tpu.vector_store %arg7[%c0_21, %c3328], %37 {strides = array<i32>} : memref<1x4096xf32, #tpu.memory_space<vmem>>, vector<1x256xf32>,
    %39 = vector.extract_strided_slice %10 {offsets = [14, 0], sizes = [1, 256], strides = [1, 1]} : vector<16x256xf32> to vector<1x256xf32>
    %c0_22 = arith.constant 0 : index
    %c3584 = arith.constant 3584 : index
    %40 = vector.load %arg7[%c0_22, %c3584] : memref<1x4096xf32, #tpu.memory_space<vmem>>, vector<1x256xf32>
    tpu.vector_store %arg7[%c0_22, %c3584], %39 {strides = array<i32>} : memref<1x4096xf32, #tpu.memory_space<vmem>>, vector<1x256xf32>,
    %41 = vector.extract_strided_slice %10 {offsets = [15, 0], sizes = [1, 256], strides = [1, 1]} : vector<16x256xf32> to vector<1x256xf32>
    %c0_23 = arith.constant 0 : index
    %c3840 = arith.constant 3840 : index
    %42 = vector.load %arg7[%c0_23, %c3840] : memref<1x4096xf32, #tpu.memory_space<vmem>>, vector<1x256xf32>
    tpu.vector_store %arg7[%c0_23, %c3840], %41 {strides = array<i32>} : memref<1x4096xf32, #tpu.memory_space<vmem>>, vector<1x256xf32>,
    %c0_24 = arith.constant 0 : index
    %c0_25 = arith.constant 0 : index
    %43 = vector.load %arg7[%c0_24, %c0_25] : memref<1x4096xf32, #tpu.memory_space<vmem>>, vector<1x4096xf32>
    %44 = arith.truncf %43 : vector<1x4096xf32> to vector<1x4096xbf16>
    %c0_26 = arith.constant 0 : index
    %c0_27 = arith.constant 0 : index
    %45 = vector.load %arg4[%c0_26, %c0_27] : memref<4096x128xbf16, #tpu.memory_space<vmem>>, vector<4096x128xbf16>
    %cst_28 = arith.constant dense<0.000000e+00> : vector<1x128xf32>
    %46 = tpu.matmul %44, %45, %cst_28 {dimension_numbers = #tpu.dot_dimension_numbers<[1], [0], [0], [1], [0, 0, 1, 1], [], []>} : vector<1x4096xbf16>, vector<4096x128xbf16>, vector<1x128xf32> -> vector<1x128xf32>
    %c0_29 = arith.constant 0 : index
    %c0_30 = arith.constant 0 : index
    %47 = vector.load %arg5[%c0_29, %c0_30] : memref<1x128xf32, #tpu.memory_space<vmem>>, vector<1x128xf32>
    %48 = arith.addf %46, %47 : vector<1x128xf32>
    %49 = vector.shape_cast %48 : vector<1x128xf32> to vector<1x1x128xf32>
    %c0_31 = arith.constant 0 : index
    %c0_32 = arith.constant 0 : index
    %c0_33 = arith.constant 0 : index
    %50 = vector.load %arg6[%c0_31, %c0_32, %c0_33] : memref<1x1x128xf32, #tpu.memory_space<vmem>>, vector<1x1x128xf32>
    tpu.vector_store %arg6[%c0_31, %c0_32, %c0_33], %49 {strides = array<i32>} : memref<1x1x128xf32, #tpu.memory_space<vmem>>, vector<1x1x128xf32>,
    return
  }
  func.func @transform_0(%arg0: i32) -> (i32, i32) {
    %c0_i32 = arith.constant 0 : i32
    %c0_i32_0 = arith.constant 0 : i32
    return %arg0, %c0_i32 : i32, i32
  }
  func.func @transform_1(%arg0: i32) -> (i32, i32) {
    %c0_i32 = arith.constant 0 : i32
    %c0_i32_0 = arith.constant 0 : i32
    %c0_i32_1 = arith.constant 0 : i32
    return %c0_i32, %c0_i32_0 : i32, i32
  }
  func.func @transform_2(%arg0: i32) -> (i32, i32) {
    %c0_i32 = arith.constant 0 : i32
    %c0_i32_0 = arith.constant 0 : i32
    %c0_i32_1 = arith.constant 0 : i32
    return %c0_i32, %c0_i32_0 : i32, i32
  }
  func.func @transform_3(%arg0: i32) -> (i32, i32) {
    %c0_i32 = arith.constant 0 : i32
    %c0_i32_0 = arith.constant 0 : i32
    %c0_i32_1 = arith.constant 0 : i32
    return %c0_i32, %c0_i32_0 : i32, i32
  }
  func.func @transform_4(%arg0: i32) -> (i32, i32) {
    %c0_i32 = arith.constant 0 : i32
    %c0_i32_0 = arith.constant 0 : i32
    %c0_i32_1 = arith.constant 0 : i32
    return %c0_i32, %c0_i32_0 : i32, i32
  }
  func.func @transform_5(%arg0: i32) -> (i32, i32, i32) {
    %c0_i32 = arith.constant 0 : i32
    %c0_i32_0 = arith.constant 0 : i32
    %c0_i32_1 = arith.constant 0 : i32
    return %arg0, %c0_i32, %c0_i32_0 : i32, i32, i32
  }
}

</mosaic_0001>

<bundles_post_ra>
// kernel: encoder_forward.1
= control target key start
LH: loop header
LB: loop body
LE: loop exit
PB: predicated region body
PF: predicated region fallthrough
CT: control target
= control target key end

     0   :  { %10 = vsyncpa [#allocation4], 0  ;;  %s5390_s0 = inlined_call_operand.vmem [shape: bf16[32,400], index: 0, kind: input, shape index: {}]   ;;  %s5391_s1 = inlined_call_operand.vmem [shape: bf16[400,256], index: 1, kind: input, shape index: {}]   ;;  %s5392_s2 = inlined_call_operand.vmem [shape: f32[1,256], index: 2, kind: input, shape index: {}]   ;;  %s5393_s3 = inlined_call_operand.hbm [shape: bf16[4096,128], index: 3, kind: input, shape index: {}]   ;;  %s5394_s4 = inlined_call_operand.vmem [shape: f32[1,128], index: 4, kind: input, shape index: {}]   ;;  %s5395_s5 = inlined_call_operand.hbm [shape: f32[2,1,128], index: 5, kind: output, shape index: {}]  }
   0x1   :  { %11 = vsyncpa [#allocation5], 0 }
   0x2   :  { %13 = vsyncpa [#allocation5 + $0x1], 0  ;;  %s4983_s18 = smov 0   ;;  %s4985_s19 = smov 0  }
   0x3   :  { %s4987_s20 = smov 0   ;;  %s4989_s21 = smov 0  }
   0x4 LB: > { %s5004_s22 = sadd.s32 4294967295, %s4946_s21   ;;  %s3790_s23 = sadd.s32 4294967294, %s4946_s21   ;;  %s4946_s21 = sphi %s4989_s21, %s5405_s21   ;;  %s4942_s20 = sphi %s4987_s20, %s5404_s20   ;;  %s4938_s19 = sphi %s4985_s19, %s5403_s19   ;;  %s4934_s18 = sphi %s4983_s18, %s5402_s18  }
   0x5   : > { %s5008_s24 = sadd.s32 1, %s4946_s21   ;;  %s136_s25 = sadd.s32 1, %s4942_s20 }
   0x6   : > { %s133_s26 = ssub.s32 %s4946_s21, %s5008_s24  ;;  %p146_p0 = scmp.ne.s32.totalorder %s4942_s20, %s4938_s19 }
   0x7   : > { %p134_p1 = scmp.eq.s32.totalorder %s133_s26, 0  ;;  %p147_p2 = scmp.eq.s32.totalorder %s5004_s22, 1 }
   0x8   : > { %p152_p3 = scmp.ne.s32.totalorder %s4938_s19, %s4934_s18  ;;  %p153_p4 = scmp.eq.s32.totalorder %s3790_s23, 1 }
   0x9   : > { %s5019_s27 = scalar_select %p134_p1, %s4942_s20, %s136_s25  }
   0xa   : > { %p5021_p5 = por %p147_p2, %p146_p0  ;;  %p5025_p6 = por %p153_p4, %p152_p3 }
   0xb   : > { %p3791_p7 = scmp.ge.s32.totalorder %s4946_s21, 1  ;;  %p160_p8 = scmp.lt.s32.totalorder %s4946_s21, 3 }
   0xc   : > { %s5397_s29 = scalar_select %p5025_p6, 1, 0 }
   0xd   : > { %p4480_p9 = scmp.eq.s32.totalorder %s5004_s22, 0  ;;  %p5032_p10 = pnand %p3791_p7, %p160_p8 }
   0xe   : > { %s4948_s6 = smov [#allocation3]  }
   0xf   : > { %s178_s7 = sshll.u32 %s4948_s6, 4  ;;  %p4472_p11 = pneg %p5032_p10  ;;  %s179_s7 = int_to_ptr.vmem [resolvable:$true] %s178_s7 }
  0x10   : > { %s4867_s8 = scalar_lea.vmem %s179_s7, 32768  ;;  %p4875_p3 = scmp.lt.s32.totalorder %s179_s7, %s179_s7 }
  0x11   : > { %p4473_p12 = pnand %p4480_p9, %p4472_p11  ;;  %p4868_p0 = scmp.ne.s32.totalorder %s179_s7, %s4867_s8 }
  0x12   : > { %p4876_p4 = scmp.lt.s32.totalorder %s4867_s8, %s4867_s8 }
  0x13   : > { %p4858_p13 = pneg %p4473_p12 }
  0x14   : > { %p4877_p6 = por %p4876_p4, %p4875_p3 }
  0x15   : > { %p4870_p1 = pnand %p4868_p0, %p4858_p13 }
  0x17   : > { %p4871_p2 = pneg %p4870_p1 }
  0x19   : > { %p4878_p7 = pnand %p4877_p6, %p4871_p2 }
  0x1b   : > { %4881 = shalt.err (!%p4878_p7)
}
  0x1c   : > { %s4949_s9 = smov 64   ;;  %s4950_s10 = smov 4  }
  0x1d   : > { %4475 = dma.hbm_to_vmem [thread:$0]  (!%p4473_p12), %s5393_s3, 32768, %s179_s7, [#allocation4], %s4949_s9, %s4949_s9, %s4950_s10  }
  0x1e   : > { %207 = sbr.rel (%p5032_p10) target bundleno = 764 (0x2fc), region = 40 }
  0x23   : > { %4925 = dma.done.wait (%p4480_p9), [#allocation4], 32768  }
  0x24   : > { %4927 = vsyncadd (%p4480_p9), [#allocation4], 4294934528  ;;  %v4519_v0 = vld [vmem:[%s5391_s1 + $0x74] ss:$8 sps:$4 sm:$0xff]   ;;  %v4521_v1 = vld [vmem:[%s5391_s1 + $0x70] ss:$8 sps:$4 sm:$0xff]  }
  0x25   : > { %582 = vmatprep.subr.bf16.mxu0 %v4519_v0  ;;  %v4522_v2 = vld [vmem:[%s5391_s1 + $0x64] ss:$8 sps:$4 sm:$0xff]   ;;  %v4524_v3 = vld [vmem:[%s5391_s1 + $0x60] ss:$8 sps:$4 sm:$0xff]   ;;  %v4525_v4 = vld [vmem:[%s5391_s1 + $0x54] ss:$8 sps:$4 sm:$0xff]  }
  0x26   : > { %583 = vmatpush1.bf16.msra.mxu0 %v4521_v1  ;;  %v4527_v5 = vld [vmem:[%s5391_s1 + $0x50] ss:$8 sps:$4 sm:$0xff]   ;;  %v4528_v6 = vld [vmem:[%s5391_s1 + $0x44] ss:$8 sps:$4 sm:$0xff]   ;;  %v4539_v7 = vld [vmem:[%s5391_s1 + $0x174] ss:$8 sps:$4 sm:$0xff]  }
  0x27   : > { %584 = vmatprep.subr.bf16.mxu0 %v4522_v2  ;;  %v4542_v8 = vld [vmem:[%s5391_s1 + $0x170] ss:$8 sps:$4 sm:$0xff]   ;;  %v4530_v9 = vld [vmem:[%s5391_s1 + $0x40] ss:$8 sps:$4 sm:$0xff]   ;;  %625 = vmatprep.subr.bf16.mxu1 %v4539_v7  ;;  %v4531_v10 = vld [vmem:[%s5391_s1 + $0x34] ss:$8 sps:$4 sm:$0xff]  }
  0x28   : > { %626 = vmatpush1.bf16.msra.mxu1 %v4542_v8  ;;  %v4545_v11 = vld [vmem:[%s5391_s1 + $0x164] ss:$8 sps:$4 sm:$0xff]   ;;  %v4548_v12 = vld [vmem:[%s5391_s1 + $0x160] ss:$8 sps:$4 sm:$0xff]   ;;  %v4533_v13 = vld [vmem:[%s5391_s1 + $0x30] ss:$8 sps:$4 sm:$0xff]  }
  0x29   : > { %627 = vmatprep.subr.bf16.mxu1 %v4545_v11  ;;  %v4534_v14 = vld [vmem:[%s5391_s1 + $0x24] ss:$8 sps:$4 sm:$0xff]   ;;  %v4551_v15 = vld [vmem:[%s5391_s1 + $0x154] ss:$8 sps:$4 sm:$0xff]   ;;  %v4554_v16 = vld [vmem:[%s5391_s1 + $0x150] ss:$8 sps:$4 sm:$0xff]  }
  0x2a   : > { %585 = vmatpush1.bf16.msra.mxu0 %v4524_v3  ;;  %s3796_s15 = sshll.u32 %s5004_s22, 1  ;;  %v4557_v17 = vld [vmem:[%s5391_s1 + $0x144] ss:$8 sps:$4 sm:$0xff]   ;;  %v4536_v18 = vld [vmem:[%s5391_s1 + $0x20] ss:$8 sps:$4 sm:$0xff]   ;;  %vm578_vm0 = vcmask 130048  }
  0x2b   : > { %586 = vmatprep.subr.bf16.mxu0 %v4525_v4  ;;  %p236_p6 = scmp.lt.s32.totalorder %s3796_s15, 3  ;;  %v4537_v19 = vld [vmem:[%s5391_s1 + $0x14] ss:$8 sps:$4 sm:$0xff]   ;;  %v4560_v20 = vld [vmem:[%s5391_s1 + $0x140] ss:$8 sps:$4 sm:$0xff]   ;;  %s233_s12 = sand.u32 1, %s4938_s19  }
  0x2c   : > { %628 = vmatpush1.bf16.msra.mxu1 %v4548_v12  ;;  %v4563_v21 = vld [vmem:[%s5391_s1 + $0x134] ss:$8 sps:$4 sm:$0xff]   ;;  %v4541_v22 = vld [vmem:[%s5391_s1 + $0x10] ss:$8 sps:$4 sm:$0xff]   ;;  %v4543_v23 = vld [vmem:[%s5391_s1 + $0x4] ss:$8 sps:$4 sm:$0xff]  }
  0x2d   : > { %629 = vmatprep.subr.bf16.mxu1 %v4551_v15  ;;  %s5407_s15 = smov (!%p236_p6, %s3796_s15), 3  ;;  %v4566_v24 = vld [vmem:[%s5391_s1 + $0x130] ss:$8 sps:$4 sm:$0xff]   ;;  %v4569_v25 = vld [vmem:[%s5391_s1 + $0x124] ss:$8 sps:$4 sm:$0xff]   ;;  %s4110_s13 = sshll.u32 %s5004_s22, 4 }
  0x2e   : > { %587 = vmatpush1.bf16.msra.mxu0 %v4527_v5  ;;  %v4547_v26 = vld [vmem:[%s5391_s1] ss:$8 sps:$4 sm:$0xff]   ;;  %s4113_s30 = sshll.u32 %s5407_s15, 4  ;;  %v4549_v27 = vld [vmem:[%s5391_s1 + $0xf4] ss:$8 sps:$4 sm:$0xff]   ;;  %s234_s15 = scalar_lea.vmem [#allocation6], %s233_s12 }
  0x2f   : > { %588 = vmatprep.subr.bf16.mxu0 %v4528_v6  ;;  %v4572_v28 = vld [vmem:[%s5391_s1 + $0x120] ss:$8 sps:$4 sm:$0xff]   ;;  %v4575_v29 = vld [vmem:[%s5391_s1 + $0x114] ss:$8 sps:$4 sm:$0xff]   ;;  %s5143_s14 = scalar_lea.vmem %s5390_s0, %s4113_s30  ;;  %v4553_v30 = vld [vmem:[%s5391_s1 + $0xf0] ss:$8 sps:$4 sm:$0xff]   ;;  %s3721_s25 = scalar_lea.hbm %s5395_s5, %s4110_s13 }
  0x30   : > { %630 = vmatpush1.bf16.msra.mxu1 %v4554_v16  ;;  %v4555_v31 = vld [vmem:[%s5391_s1 + $0xe4] ss:$8 sps:$4 sm:$0xff]   ;;  %v4578_v32 = vld [vmem:[%s5391_s1 + $0x110] ss:$8 sps:$4 sm:$0xff]   ;;  %v4559_v34 = vld [vmem:[%s5391_s1 + $0xe0] ss:$8 sps:$4 sm:$0xff]  }
  0x31   : > { %631 = vmatprep.subr.bf16.mxu1 %v4557_v17  ;;  %v4581_v33 = vld [vmem:[%s5391_s1 + $0x104] ss:$8 sps:$4 sm:$0xff]   ;;  %v4561_v36 = vld [vmem:[%s5391_s1 + $0xd4] ss:$8 sps:$4 sm:$0xff]   ;;  %v4584_v37 = vld [vmem:[%s5391_s1 + $0x100] ss:$8 sps:$4 sm:$0xff]  }
  0x32   : > { %589 = vmatpush1.bf16.msra.mxu0 %v4530_v9  ;;  %v4593_v35 = vld [vmem:[%s5143_s14 + $0xc] ss:$16 sps:$4 sm:$0xff]   ;;  %v4599_v39 = vld [vmem:[%s5143_s14 + $0x4] ss:$16 sps:$4 sm:$0xff]   ;;  %v4565_v40 = vld [vmem:[%s5391_s1 + $0xd0] ss:$8 sps:$4 sm:$0xff]  }
  0x33   : > { %590 = vmatprep.subr.bf16.mxu0 %v4531_v10  ;;  %v4587_v38 = vld [vmem:[%s5391_s1 + $0x184] ss:$8 sps:$4 sm:$0xff]   ;;  %3853 = vmatprep.mubr.msk.bf16.mxu1 %vm578_vm0, %v4593_v35  ;;  %v4590_v42 = vld [vmem:[%s5391_s1 + $0x180] ss:$8 sps:$4 sm:$0xff]   ;;  %v4573_v45 = vld [vmem:[%s5391_s1 + $0xb4] ss:$8 sps:$4 sm:$0xff]  }
  0x34   : > { %632 = vmatpush1.bf16.msra.mxu1 %v4560_v20  ;;  %614 = vmatprep.mubr.bf16.mxu0 %v4599_v39  ;;  %v4567_v41 = vld [vmem:[%s5391_s1 + $0xc4] ss:$8 sps:$4 sm:$0xff]   ;;  %v4571_v43 = vld [vmem:[%s5391_s1 + $0xc0] ss:$8 sps:$4 sm:$0xff]   ;;  %v4577_v46 = vld [vmem:[%s5391_s1 + $0xb0] ss:$8 sps:$4 sm:$0xff]  }
  0x35   : > { %633 = vmatprep.subr.bf16.mxu1 %v4563_v21  ;;  %v4591_v44 = vld [vmem:[%s5143_s14 + $0x8] ss:$16 sps:$4 sm:$0xff]   ;;  %v4579_v47 = vld [vmem:[%s5391_s1 + $0xa4] ss:$8 sps:$4 sm:$0xff]   ;;  %v4585_v49 = vld [vmem:[%s5391_s1 + $0x94] ss:$8 sps:$4 sm:$0xff]  }
  0x36   : > { %591 = vmatpush1.bf16.msra.mxu0 %v4533_v13  ;;  %v4583_v48 = vld [vmem:[%s5391_s1 + $0xa0] ss:$8 sps:$4 sm:$0xff]   ;;  %v4589_v50 = vld [vmem:[%s5391_s1 + $0x90] ss:$8 sps:$4 sm:$0xff]   ;;  %v4594_v51 = vld [vmem:[%s5391_s1 + $0x84] ss:$8 sps:$4 sm:$0xff]  }
  0x37   : > { %592 = vmatprep.subr.bf16.mxu0 %v4534_v14  ;;  %v4596_v52 = vld [vmem:[%s5391_s1 + $0x80] ss:$8 sps:$4 sm:$0xff]   ;;  %v4600_v54 = vld [vmem:[#allocation3 + $0x78] sm:$0xff]   ;;  %v4604_v58 = vld [vmem:[#allocation3 + $0x70] sm:$0xff]   ;;  %s3723_s16 = sshll.u32 %s234_s15, 4  ;;  %s3711_s26 = scalar_lea.sflag [#allocation5], %s233_s12  ;;  %s3724_s16 = int_to_ptr.vmem [resolvable:$true] %s3723_s16 }
  0x38   : > { %634 = vmatpush1.bf16.msra.mxu1 %v4566_v24  ;;  %v4597_v53 = vld [vmem:[%s5143_s14] ss:$16 sps:$4 sm:$0xff]   ;;  %v4601_v55 = vld [vmem:[#allocation3 + $0xf8] sm:$0xff]   ;;  %v4608_v62 = vld [vmem:[#allocation3 + $0x68] sm:$0xff]   ;;  %v299_v24 = vlaneseq  ;;  %s4882_s6 = scalar_lea.vmem %s3724_s16, 16  ;;  %s4952_s22 = smov [#allocation6]  }
  0x39   : > { %635 = vmatprep.subr.bf16.mxu1 %v4569_v25  ;;  %v4602_v56 = vld [vmem:[#allocation3 + $0x38] sm:$0xff]   ;;  %v4605_v59 = vld [vmem:[#allocation3 + $0xf0] sm:$0xff]   ;;  %v4609_v63 = vld [vmem:[#allocation3 + $0xe8] sm:$0xff]   ;;  %p4883_p8 = scmp.ne.s32.totalorder %s3724_s16, %s4882_s6  ;;  %s4886_s30 = sshll.u32 %s4952_s22, 4  ;;  %s4887_s30 = int_to_ptr.vmem [resolvable:$false] %s4886_s30 }
  0x3a   : > { %593 = vmatpush1.bf16.msra.mxu0 %v4536_v18  ;;  %v4603_v57 = vld [vmem:[#allocation3 + $0xb8] sm:$0xff]   ;;  %v4606_v60 = vld [vmem:[#allocation3 + $0x30] sm:$0xff]   ;;  %v4610_v0 = vld [vmem:[#allocation3 + $0x28] sm:$0xff]   ;;  %v5209_v25 = vshrl.u32 %v299_v24, 7  ;;  %vm5223_vm5 = vcmp.lt.s32.totalorder %v299_v24, 256  ;;  %s4888_s7 = scalar_lea.vmem %s4887_s30, 32  ;;  %p4889_p11 = scmp.lt.s32.totalorder %s3724_s16, %s4887_s30 }
  0x3b   : > { %594 = vmatprep.subr.bf16.mxu0 %v4537_v19  ;;  %v4607_v61 = vld [vmem:[#allocation3 + $0xb0] sm:$0xff]   ;;  %v4611_v1 = vld [vmem:[#allocation3 + $0xa8] sm:$0xff]   ;;  %v4612_v2 = vld [vmem:[#allocation3 + $0x60] sm:$0xff]   ;;  %p4884_p9 = pnand %p4883_p8, %p5021_p5  ;;  %p4890_p12 = scmp.lt.s32.totalorder %s4888_s7, %s4882_s6 }
  0x3c   : > { %636 = vmatpush1.bf16.msra.mxu1 %v4572_v28  ;;  %v4613_v3 = vld [vmem:[#allocation3 + $0xe0] sm:$0xff]   ;;  %v4616_v6 = vld [vmem:[#allocation3 + $0x58] sm:$0xff]   ;;  %v4620_v10 = vld [vmem:[#allocation3 + $0x50] sm:$0xff]   ;;  %v5218_v28 = vsub.s32 1, %v5209_v25 }
  0x3d   : > { %637 = vmatprep.subr.bf16.mxu1 %v4575_v29  ;;  %v4614_v4 = vld [vmem:[#allocation3 + $0x20] sm:$0xff]   ;;  %v4617_v7 = vld [vmem:[#allocation3 + $0xd8] sm:$0xff]   ;;  %v4621_v11 = vld [vmem:[#allocation3 + $0xd0] sm:$0xff]   ;;  %p4885_p10 = pneg %p4884_p9  ;;  %p4891_p13 = por %p4890_p12, %p4889_p11 }
  0x3e   : > { %595 = vmatpush1.bf16.msra.mxu0 %v4541_v22  ;;  %v4615_v5 = vld [vmem:[#allocation3 + $0xa0] sm:$0xff]   ;;  %v4618_v8 = vld [vmem:[#allocation3 + $0x18] sm:$0xff]   ;;  %v4622_v12 = vld [vmem:[#allocation3 + $0x10] sm:$0xff]  }
  0x3f   : > { %596 = vmatprep.subr.bf16.mxu0 %v4543_v23  ;;  %v4619_v9 = vld [vmem:[#allocation3 + $0x98] sm:$0xff]   ;;  %v4623_v13 = vld [vmem:[#allocation3 + $0x90] sm:$0xff]   ;;  %v4624_v14 = vld [vmem:[#allocation3 + $0x48] sm:$0xff]   ;;  %p4892_p0 = pnand %p4891_p13, %p4885_p10 }
  0x40   : > { %638 = vmatpush1.bf16.msra.mxu1 %v4578_v32  ;;  %v4625_v15 = vld [vmem:[#allocation3 + $0xc8] sm:$0xff]   ;;  %v4628_v18 = vld [vmem:[#allocation3 + $0x40] sm:$0xff]   ;;  %v4632_v22 = vld [vmem:[#allocation3 + $0x178] sm:$0xff]  }
  0x41   : > { %639 = vmatprep.subr.bf16.mxu1 %v4581_v33  ;;  %v4626_v16 = vld [vmem:[#allocation3 + $0x8] sm:$0xff]   ;;  %v4629_v19 = vld [vmem:[#allocation3 + $0xc0] sm:$0xff]   ;;  %v4633_v23 = vld [vmem:[#allocation3 + $0x1f8] sm:$0xff]   ;;  %v4951_v33 = vmov 1966171168  }
  0x42   : > { %597 = vmatpush1.bf16.msra.mxu0 %v4547_v26  ;;  %v4627_v17 = vld [vmem:[#allocation3 + $0x88] sm:$0xff]   ;;  %v4630_v20 = vld [vmem:[#allocation3] sm:$0xff]   ;;  %v5212_v26 = vsub.s32 0, %v5209_v25 }
  0x43   : > { %598 = vmatprep.subr.bf16.mxu0 %v4549_v27  ;;  %v4631_v21 = vld [vmem:[#allocation3 + $0x80] sm:$0xff]  }
  0x44   : > { %640 = vmatpush1.bf16.msra.mxu1 %v4584_v37  ;;  %v297_v27 = vld [vmem:[%s5392_s2] sm:$0x3] }
  0x45   : > { %655 = vmatprep.subr.bf16.mxu1 %v4587_v38 }
  0x46   : > { %599 = vmatpush2.bf16.msra.mxu0 %v4553_v30  ;;  %v302_v30 = vrot.slane %v297_v27, %v5212_v26 }
  0x47   : > { %600 = vmatprep.subr.bf16.mxu0 %v4555_v31  ;;  %v306_v31 = vrot.slane %v297_v27, %v5218_v28 }
  0x48   : > { %656 = vmatpush2.bf16.msra.mxu1 %v4590_v42 }
  0x49   : > { %4114 = vmatprep.subr.bf16.mxu1 %v4600_v54 }
  0x4a   : > { %601 = vmatpush2.bf16.msra.mxu0 %v4559_v34  ;;  %v684_v34 = vunpack.c.l.s4 %v4951_v33 }
  0x4b   : > { %602 = vmatprep.subr.bf16.mxu0 %v4561_v36  ;;  %658 = vmatmul.mubr.bf16.vlgmr.msra.gmra.mxu1 %v4591_v44 }
  0x4c   : > { %4115 = vmatpush3.bf16.msra.mxu1 %v4602_v56 }
  0x4d   : > { %4116 = vmatprep.subr.bf16.mxu1 %v4604_v58 }
  0x4e   : > { %603 = vmatpush2.bf16.msra.mxu0 %v4565_v40  ;;  %v685_v40 = vunpack.c.0.s8 %v684_v34 }
  0x4f   : > { %604 = vmatprep.subr.bf16.mxu0 %v4567_v41 }
  0x50   : > { %4117 = vmatpush3.bf16.msra.mxu1 %v4606_v60 }
  0x51   : > { %4118 = vmatprep.subr.bf16.mxu1 %v4608_v62 }
  0x52   : > { %605 = vmatpush2.bf16.msra.mxu0 %v4571_v43 }
  0x53   : > { %606 = vmatprep.subr.bf16.mxu0 %v4573_v45 }
  0x54   : > { %4119 = vmatpush3.bf16.msra.mxu1 %v4610_v0 }
  0x55   : > { %4120 = vmatprep.subr.bf16.mxu1 %v4612_v2 }
  0x56   : > { %607 = vmatpush2.bf16.msra.mxu0 %v4577_v46 }
  0x57   : > { %608 = vmatprep.subr.bf16.mxu0 %v4579_v47 }
  0x58   : > { %4121 = vmatpush3.bf16.msra.mxu1 %v4614_v4 }
  0x59   : > { %4122 = vmatprep.subr.bf16.mxu1 %v4616_v6 }
  0x5a   : > { %609 = vmatpush2.bf16.msra.mxu0 %v4583_v48 }
  0x5b   : > { %610 = vmatprep.subr.bf16.mxu0 %v4585_v49  ;;  %v688_v49 = vsub.s32 %v685_v40, %v5209_v25 }
  0x5c   : > { %4123 = vmatpush3.bf16.msra.mxu1 %v4618_v8 }
  0x5d   : > { %4124 = vmatprep.subr.bf16.mxu1 %v4620_v10 }
  0x5e   : > { %611 = vmatpush2.bf16.msra.mxu0 %v4589_v50 }
  0x5f   : > { %612 = vmatprep.subr.bf16.mxu0 %v4594_v51 }
  0x60   : > { %4125 = vmatpush3.bf16.msra.mxu1 %v4622_v12 }
  0x61   : > { %4126 = vmatprep.subr.bf16.mxu1 %v4624_v14 }
  0x62   : > { %613 = vmatpush2.bf16.msra.mxu0 %v4596_v52 }
  0x63   : > { %4136 = vmatprep.subr.bf16.mxu0 %v4601_v55 }
  0x64   : > { %4127 = vmatpush3.bf16.msra.mxu1 %v4626_v16 }
  0x65   : > { %615 = vmatmul.mubr.bf16.vlgmr.msra.gmra.mxu0 %v4597_v53  ;;  %4128 = vmatprep.subr.bf16.mxu1 %v4628_v18 }
  0x66   : > { %4137 = vmatpush3.bf16.msra.mxu0 %v4603_v57 }
  0x67   : > { %4138 = vmatprep.subr.bf16.mxu0 %v4605_v59 }
  0x68   : > { %4129 = vmatpush3.bf16.msra.mxu1 %v4630_v20 }
  0x69   : > { %4158 = vmatprep.subr.bf16.mxu1 %v4632_v22  ;;  %v5248_v22 = vsub.s32 3, %v5209_v25 }
  0x6a   : > { %4139 = vmatpush3.bf16.msra.mxu0 %v4607_v61  ;;  %v4648_v61 = vld [vmem:[#allocation3 + $0x158] sm:$0xff]  }
  0x6b   : > { %4140 = vmatprep.subr.bf16.mxu0 %v4609_v63 }
  0x6e   : > { %4141 = vmatpush3.bf16.msra.mxu0 %v4611_v1 }
  0x6f   : > { %4142 = vmatprep.subr.bf16.mxu0 %v4613_v3 }
  0x72   : > { %4143 = vmatpush3.bf16.msra.mxu0 %v4615_v5 }
  0x73   : > { %4144 = vmatprep.subr.bf16.mxu0 %v4617_v7 }
  0x76   : > { %4145 = vmatpush3.bf16.msra.mxu0 %v4619_v9 }
  0x77   : > { %4146 = vmatprep.subr.bf16.mxu0 %v4621_v11 }
  0x7a   : > { %4147 = vmatpush3.bf16.msra.mxu0 %v4623_v13 }
  0x7b   : > { %4148 = vmatprep.subr.bf16.mxu0 %v4625_v15 }
  0x7e   : > { %4149 = vmatpush3.bf16.msra.mxu0 %v4627_v17 }
  0x7f   : > { %4150 = vmatprep.subr.bf16.mxu0 %v4629_v19 }
  0x82   : > { %4151 = vmatpush3.bf16.msra.mxu0 %v4631_v21 }
  0x83   : > { %4180 = vmatprep.subr.bf16.mxu0 %v4633_v23  ;;  %v5251_v23 = vsub.s32 2, %v5209_v25 }
 0x10b   : > { %v659_v29 = vpop.f32.mrf.mxu1 }
 0x10d   : > { %v661_v35 = vpop.f32.mrf.mxu1 }
 0x10f   : > { %v663_v43 = vpop.f32.mrf.mxu1 }
 0x111   : > { %v665_v53 = vpop.f32.mrf.mxu1 }
 0x125   : > { %v616_v32 = vpop.f32.mrf.mxu0 }
 0x126   : > { %v617_v36 = vadd.f32 %v616_v32, %v302_v30 }
 0x127   : > { %v618_v37 = vpop.f32.mrf.mxu0 }
 0x128   : > { %v660_v38 = vadd.f32 %v659_v29, %v617_v36  ;;  %v619_v39 = vadd.f32 %v618_v37, %v306_v31  ;;  %v5262_v29 = vsub.s32 5, %v5209_v25 }
 0x129   : > { %v620_v41 = vpop.f32.mrf.mxu0 }
 0x12a   : > { %v672_v42 = vmul.f32 0.01, %v660_v38  ;;  %v662_v44 = vadd.f32 %v661_v35, %v619_v39  ;;  %v621_v45 = vadd.f32 %v620_v41, %v302_v30  ;;  %vm668_vm1 = vcmp.ge.f32.partialorder %v660_v38, 0.0 }
 0x12b   : > { %v622_v46 = vpop.f32.mrf.mxu0  ;;  %v5265_v30 = vsub.s32 7, %v5209_v25 }
 0x12c   : > { %vm669_vm2 = vcmp.ge.f32.partialorder %v662_v44, 0.0  ;;  %v673_v47 = vmul.f32 0.01, %v662_v44  ;;  %v664_v48 = vadd.f32 %v663_v43, %v621_v45  ;;  %v623_v50 = vadd.f32 %v622_v46, %v306_v31  ;;  %v4635_v43 = vld [vmem:[#allocation3 + $0x1b8] sm:$0xff]   ;;  %v4637_v45 = vld [vmem:[#allocation3 + $0x1f0] sm:$0xff]  }
 0x12d   : > { %v676_v51 = vsel %vm668_vm1, %v660_v38, %v672_v42  ;;  %v4634_v42 = vld [vmem:[#allocation3 + $0x138] sm:$0xff]   ;;  %v5286_v46 = vsub.s32 6, %v5209_v25 }
 0x12e   : > { %v677_v52 = vsel %vm669_vm2, %v662_v44, %v673_v47  ;;  %v666_v56 = vadd.f32 %v665_v53, %v623_v50  ;;  %vm670_vm3 = vcmp.ge.f32.partialorder %v664_v48, 0.0  ;;  %v674_v57 = vmul.f32 0.01, %v664_v48  ;;  %v4636_v44 = vld [vmem:[#allocation3 + $0x170] sm:$0xff]   ;;  %v4641_v53 = vld [vmem:[#allocation3 + $0x1e8] sm:$0xff]  }
 0x12f   : > { %v682_v54 = vcombine.low %v676_v51, %v677_v52  ;;  %v719_v55 = vcombine.high %v676_v51, %v677_v52  ;;  %v4638_v50 = vld [vmem:[#allocation3 + $0x130] sm:$0xff]   ;;  %v4640_v52 = vld [vmem:[#allocation3 + $0x168] sm:$0xff]  }
 0x130   : > { %vm671_vm4 = vcmp.ge.f32.partialorder %v666_v56, 0.0  ;;  %v675_v60 = vmul.f32 0.01, %v666_v56  ;;  %v678_v2 = vsel %vm670_vm3, %v664_v48, %v674_v57  ;;  %v4639_v51 = vld [vmem:[#allocation3 + $0x1b0] sm:$0xff]   ;;  %v4644_v57 = vld [vmem:[#allocation3 + $0x160] sm:$0xff]  }
 0x131   : > { %v689_v58 = vrot.slane %v682_v54, %v688_v49  ;;  %v726_v59 = vrot.slane %v719_v55, %v688_v49  ;;  %v4642_v55 = vld [vmem:[#allocation3 + $0x128] sm:$0xff]  }
 0x132   : > { %v679_v3 = vsel %vm671_vm4, %v666_v56, %v675_v60  ;;  %v4643_v56 = vld [vmem:[#allocation3 + $0x1a8] sm:$0xff]   ;;  %v4647_v60 = vld [vmem:[#allocation3 + $0x1a0] sm:$0xff]  }
 0x133   : > { %v696_v62 = vrot.slane %v689_v58, %v688_v49  ;;  %v703_v63 = vcombine.high %v689_v58, %v689_v58  ;;  %v733_v0 = vrot.slane %v726_v59, %v688_v49  ;;  %v736_v1 = vcombine.high %v726_v59, %v726_v59  ;;  %v4645_v58 = vld [vmem:[#allocation3 + $0x1e0] sm:$0xff]  }
 0x134   : > { %v754_v8 = vcombine.low %v678_v2, %v679_v3  ;;  %v787_v9 = vcombine.high %v678_v2, %v679_v3  ;;  %v4646_v59 = vld [vmem:[#allocation3 + $0x120] sm:$0xff]   ;;  %v4653_v2 = vld [vmem:[#allocation3 + $0x1d0] sm:$0xff]  }
 0x135   : > { %702 = vst.msk [vmem:[#allocation2] sm:$0x3] %vm5223_vm5, %v696_v62  ;;  %v710_v4 = vrot.slane %v703_v63, %v688_v49  ;;  %v713_v5 = vcombine.high %v696_v62, %v696_v62  ;;  %735 = vst.msk [vmem:[#allocation2 + $0x8] sm:$0x3] %vm5223_vm5, %v733_v0  ;;  %v743_v6 = vrot.slane %v736_v1, %v688_v49  ;;  %v4649_v62 = vld [vmem:[#allocation3 + $0x1d8] sm:$0xff]   ;;  %v4652_v1 = vld [vmem:[#allocation3 + $0x150] sm:$0xff]  }
 0x136   : > { %v746_v7 = vcombine.high %v733_v0, %v733_v0  ;;  %v761_v12 = vrot.slane %v754_v8, %v688_v49  ;;  %v794_v13 = vrot.slane %v787_v9, %v688_v49  ;;  %v4650_v63 = vld [vmem:[#allocation3 + $0x118] sm:$0xff]   ;;  %v4654_v3 = vld [vmem:[#allocation3 + $0x110] sm:$0xff]   ;;  %v4659_v8 = vld [vmem:[#allocation3 + $0x188] sm:$0xff]  }
 0x137   : > { %712 = vst.msk [vmem:[#allocation2 + $0x2] sm:$0x3] %vm5223_vm5, %v710_v4  ;;  %715 = vst.msk [vmem:[#allocation2 + $0x4] sm:$0x3] %vm5223_vm5, %v713_v5  ;;  %v716_v10 = vcombine.high %v710_v4, %v710_v4  ;;  %v749_v11 = vcombine.high %v743_v6, %v743_v6  ;;  %v4651_v0 = vld [vmem:[#allocation3 + $0x198] sm:$0xff]   ;;  %v4655_v4 = vld [vmem:[#allocation3 + $0x190] sm:$0xff]  }
 0x138   : > { %745 = vst.msk [vmem:[#allocation2 + $0xa] sm:$0x3] %vm5223_vm5, %v743_v6  ;;  %748 = vst.msk [vmem:[#allocation2 + $0xc] sm:$0x3] %vm5223_vm5, %v746_v7  ;;  %v768_v14 = vrot.slane %v761_v12, %v688_v49  ;;  %v771_v15 = vcombine.high %v761_v12, %v761_v12  ;;  %v801_v16 = vrot.slane %v794_v13, %v688_v49  ;;  %v4656_v5 = vld [vmem:[#allocation3 + $0x148] sm:$0xff]   ;;  %v4660_v9 = vld [vmem:[#allocation3 + $0x140] sm:$0xff]  }
 0x139   : > { %718 = vst.msk [vmem:[#allocation2 + $0x6] sm:$0x3] %vm5223_vm5, %v716_v10  ;;  %751 = vst.msk [vmem:[#allocation2 + $0xe] sm:$0x3] %vm5223_vm5, %v749_v11  ;;  %v804_v17 = vcombine.high %v794_v13, %v794_v13  ;;  %v4657_v6 = vld [vmem:[#allocation3 + $0x1c8] sm:$0xff]   ;;  %v4661_v10 = vld [vmem:[#allocation3 + $0x1c0] sm:$0xff]  }
 0x13a   : > { %770 = vst.msk [vmem:[#allocation2 + $0x10] sm:$0x3] %vm5223_vm5, %v768_v14  ;;  %v778_v18 = vrot.slane %v771_v15, %v688_v49  ;;  %v781_v19 = vcombine.high %v768_v14, %v768_v14  ;;  %803 = vst.msk [vmem:[#allocation2 + $0x18] sm:$0x3] %vm5223_vm5, %v801_v16  ;;  %v814_v21 = vcombine.high %v801_v16, %v801_v16  ;;  %v4658_v7 = vld [vmem:[#allocation3 + $0x108] sm:$0xff]   ;;  %v5295_v11 = vsub.s32 4, %v5209_v25 }
 0x13b   : > { %v811_v20 = vrot.slane %v804_v17, %v688_v49  ;;  %v4662_v12 = vld [vmem:[#allocation3 + $0x100] sm:$0xff]   ;;  %v4664_v16 = vld [vmem:[#allocation3 + $0x278] sm:$0xff]  }
 0x13c   : > { %780 = vst.msk [vmem:[#allocation2 + $0x12] sm:$0x3] %vm5223_vm5, %v778_v18  ;;  %783 = vst.msk [vmem:[#allocation2 + $0x14] sm:$0x3] %vm5223_vm5, %v781_v19  ;;  %v784_v24 = vcombine.high %v778_v18, %v778_v18  ;;  %v4663_v13 = vld [vmem:[#allocation3 + $0x180] sm:$0xff]   ;;  %v4665_v17 = vld [vmem:[#allocation3 + $0x2f8] sm:$0xff]  }
 0x13d   : > { %813 = vst.msk [vmem:[#allocation2 + $0x1a] sm:$0x3] %vm5223_vm5, %v811_v20  ;;  %816 = vst.msk [vmem:[#allocation2 + $0x1c] sm:$0x3] %vm5223_vm5, %v814_v21  ;;  %v817_v27 = vcombine.high %v811_v20, %v811_v20  ;;  %v4666_v19 = vld [vmem:[#allocation3 + $0x238] sm:$0xff]  }
 0x13e   : > { %786 = vst.msk [vmem:[#allocation2 + $0x16] sm:$0x3] %vm5223_vm5, %v784_v24  ;;  %v4667_v24 = vld [vmem:[#allocation3 + $0x2b8] sm:$0xff]  }
 0x13f   : > { %819 = vst.msk [vmem:[#allocation2 + $0x1e] sm:$0x3] %vm5223_vm5, %v817_v27 }
 0x140   : > { %v5271_v31 = vld [vmem:[#allocation2] sm:$0xff]  ;;  %v5288_v49 = vld [vmem:[#allocation2 + $0x8] sm:$0xff] }
 0x141   : > { %v835_v32 = vrot.slane %v5271_v31, %v5218_v28  ;;  %v843_v33 = vrot.slane %v5271_v31, %v5248_v22  ;;  %v831_v34 = vrot.slane %v5271_v31, %v5212_v26  ;;  %v839_v35 = vrot.slane %v5271_v31, %v5251_v23 }
 0x142   : > { %v851_v36 = vrot.slane %v5271_v31, %v5262_v29  ;;  %v859_v37 = vrot.slane %v5271_v31, %v5265_v30  ;;  %v5292_v54 = vrot.slane %v5288_v49, %v5286_v46  ;;  %v847_v14 = vrot.slane %v5271_v31, %v5295_v11 }
 0x143   : > { %v989_v38 = vpack.c.bf16 %v835_v32, %v835_v32  ;;  %v991_v39 = vpack.c.bf16 %v843_v33, %v843_v33  ;;  %v988_v40 = vpack.c.bf16 %v831_v34, %v831_v34  ;;  %v990_v41 = vpack.c.bf16 %v839_v35, %v839_v35  ;;  %v4668_v32 = vld [vmem:[#allocation3 + $0x270] sm:$0xff]  }
 0x144   : > { %v993_v47 = vpack.c.bf16 %v851_v36, %v851_v36  ;;  %v995_v48 = vpack.c.bf16 %v859_v37, %v859_v37  ;;  %v855_v15 = vrot.slane %v5271_v31, %v5286_v46  ;;  %v867_v18 = vrot.slane %v5288_v49, %v5218_v28  ;;  %v4669_v33 = vld [vmem:[#allocation3 + $0x2f0] sm:$0xff]   ;;  %v4672_v36 = vld [vmem:[#allocation3 + $0x268] sm:$0xff]  }
 0x145   : > { %3101 = vmatprep.mubr.bf16.mxu1 %v989_v38  ;;  %3141 = vmatprep.mubr.bf16.mxu0 %v991_v39  ;;  %v875_v25 = vrot.slane %v5288_v49, %v5248_v22  ;;  %v992_v20 = vpack.c.bf16 %v847_v14, %v847_v14  ;;  %v4670_v34 = vld [vmem:[#allocation3 + $0x230] sm:$0xff]   ;;  %v4673_v37 = vld [vmem:[#allocation3 + $0x2e8] sm:$0xff]  }
 0x146   : > { %3102 = vmatmul.mubr.bf16.vlgmr.msra.gmra.mxu1 %v988_v40  ;;  %3142 = vmatmul.mubr.bf16.vlgmr.msra.gmra.mxu0 %v990_v41  ;;  %v994_v21 = vpack.c.bf16 %v855_v15, %v855_v15  ;;  %v997_v27 = vpack.c.bf16 %v867_v18, %v867_v18  ;;  %v4671_v35 = vld [vmem:[#allocation3 + $0x2b0] sm:$0xff]   ;;  %v4674_v38 = vld [vmem:[#allocation3 + $0x228] sm:$0xff]   ;;  %v4676_v40 = vld [vmem:[#allocation3 + $0x260] sm:$0xff]  }
 0x147   : > { %4159 = vmatpush3.bf16.msra.mxu1 %v4634_v42  ;;  %4181 = vmatpush3.bf16.msra.mxu0 %v4635_v43  ;;  %v999_v31 = vpack.c.bf16 %v875_v25, %v875_v25  ;;  %v4675_v39 = vld [vmem:[#allocation3 + $0x2a8] sm:$0xff]   ;;  %v4677_v41 = vld [vmem:[#allocation3 + $0x2e0] sm:$0xff]   ;;  %v4702_v14 = vld [vmem:[#allocation3 + $0x330] sm:$0xff]  }
 0x148   : > { %3181 = vmatprep.mubr.bf16.mxu1 %v993_v47  ;;  %3221 = vmatprep.mubr.bf16.mxu0 %v995_v48  ;;  %v4678_v42 = vld [vmem:[#allocation3 + $0x220] sm:$0xff]   ;;  %v4682_v47 = vld [vmem:[#allocation3 + $0x218] sm:$0xff]   ;;  %v4703_v15 = vld [vmem:[#allocation3 + $0x3b0] sm:$0xff]  }
 0x149   : > { %4160 = vmatprep.subr.bf16.mxu1 %v4636_v44  ;;  %4182 = vmatprep.subr.bf16.mxu0 %v4637_v45  ;;  %v4679_v43 = vld [vmem:[#allocation3 + $0x2a0] sm:$0xff]   ;;  %v4680_v44 = vld [vmem:[#allocation3 + $0x258] sm:$0xff]   ;;  %v4706_v18 = vld [vmem:[#allocation3 + $0x328] sm:$0xff]  }
 0x14a   : > { %v4681_v45 = vld [vmem:[#allocation3 + $0x2d8] sm:$0xff]   ;;  %v4707_v25 = vld [vmem:[#allocation3 + $0x3a8] sm:$0xff]  }
 0x14b   : > { %4161 = vmatpush3.bf16.msra.mxu1 %v4638_v50  ;;  %4183 = vmatpush3.bf16.msra.mxu0 %v4639_v51  ;;  %v4683_v48 = vld [vmem:[#allocation3 + $0x298] sm:$0xff]   ;;  %v4684_v50 = vld [vmem:[#allocation3 + $0x250] sm:$0xff]  }
 0x14c   : > { %4162 = vmatprep.subr.bf16.mxu1 %v4640_v52  ;;  %4184 = vmatprep.subr.bf16.mxu0 %v4641_v53  ;;  %v4685_v51 = vld [vmem:[#allocation3 + $0x2d0] sm:$0xff]  }
 0x14d   : > { %v4686_v52 = vld [vmem:[#allocation3 + $0x210] sm:$0xff]  }
 0x14e   : > { %v4687_v53 = vld [vmem:[#allocation3 + $0x290] sm:$0xff]  }
 0x14f   : > { %4163 = vmatpush3.bf16.msra.mxu1 %v4642_v55  ;;  %4185 = vmatpush3.bf16.msra.mxu0 %v4643_v56  ;;  %v4688_v55 = vld [vmem:[#allocation3 + $0x248] sm:$0xff]  }
 0x150   : > { %4164 = vmatprep.subr.bf16.mxu1 %v4644_v57  ;;  %4186 = vmatprep.subr.bf16.mxu0 %v4645_v58  ;;  %v4689_v56 = vld [vmem:[#allocation3 + $0x2c8] sm:$0xff]  }
 0x151   : > { %v4690_v57 = vld [vmem:[#allocation3 + $0x208] sm:$0xff]  }
 0x152   : > { %v4691_v58 = vld [vmem:[#allocation3 + $0x288] sm:$0xff]  }
 0x153   : > { %4165 = vmatpush3.bf16.msra.mxu1 %v4646_v59  ;;  %4187 = vmatpush3.bf16.msra.mxu0 %v4647_v60  ;;  %v4692_v59 = vld [vmem:[#allocation3 + $0x240] sm:$0xff]  }
 0x154   : > { %4166 = vmatprep.subr.bf16.mxu1 %v4648_v61  ;;  %4188 = vmatprep.subr.bf16.mxu0 %v4649_v62  ;;  %v4693_v60 = vld [vmem:[#allocation3 + $0x2c0] sm:$0xff]  }
 0x155   : > { %v4694_v61 = vld [vmem:[#allocation3 + $0x200] sm:$0xff]  }
 0x156   : > { %v4695_v62 = vld [vmem:[#allocation3 + $0x280] sm:$0xff]  }
 0x157   : > { %4167 = vmatpush3.bf16.msra.mxu1 %v4650_v63  ;;  %4189 = vmatpush3.bf16.msra.mxu0 %v4651_v0  ;;  %v863_v63 = vrot.slane %v5288_v49, %v5212_v26  ;;  %v4696_v0 = vld [vmem:[#allocation3 + $0x378] sm:$0xff]  }
 0x158   : > { %4168 = vmatprep.subr.bf16.mxu1 %v4652_v1  ;;  %4190 = vmatprep.subr.bf16.mxu0 %v4653_v2  ;;  %v871_v1 = vrot.slane %v5288_v49, %v5251_v23  ;;  %v4697_v2 = vld [vmem:[#allocation3 + $0x3f8] sm:$0xff]  }
 0x15b   : > { %4169 = vmatpush3.bf16.msra.mxu1 %v4654_v3  ;;  %4191 = vmatpush3.bf16.msra.mxu0 %v4655_v4  ;;  %v883_v3 = vrot.slane %v5288_v49, %v5262_v29  ;;  %v4698_v4 = vld [vmem:[#allocation3 + $0x338] sm:$0xff]  }
 0x15c   : > { %4170 = vmatprep.subr.bf16.mxu1 %v4656_v5  ;;  %4192 = vmatprep.subr.bf16.mxu0 %v4657_v6  ;;  %v891_v5 = vrot.slane %v5288_v49, %v5265_v30  ;;  %v996_v6 = vpack.c.bf16 %v863_v63, %v863_v63  ;;  %v4735_v63 = vld [vmem:[#allocation3 + $0x4b0] sm:$0xff]  }
 0x15f   : > { %4171 = vmatpush3.bf16.msra.mxu1 %v4658_v7  ;;  %4193 = vmatpush3.bf16.msra.mxu0 %v4659_v8  ;;  %v4699_v7 = vld [vmem:[#allocation3 + $0x3b8] sm:$0xff]   ;;  %v998_v8 = vpack.c.bf16 %v871_v1, %v871_v1  ;;  %v4737_v1 = vld [vmem:[#allocation3 + $0x4e8] sm:$0xff]  }
 0x160   : > { %4172 = vmatprep.subr.bf16.mxu1 %v4660_v9  ;;  %4194 = vmatprep.subr.bf16.mxu0 %v4661_v10  ;;  %v4700_v9 = vld [vmem:[#allocation3 + $0x370] sm:$0xff]   ;;  %v1001_v10 = vpack.c.bf16 %v883_v3, %v883_v3  ;;  %v4740_v3 = vld [vmem:[#allocation3 + $0x460] sm:$0xff]  }
 0x163   : > { %4173 = vmatpush3.bf16.msra.mxu1 %v4662_v12  ;;  %4195 = vmatpush3.bf16.msra.mxu0 %v4663_v13  ;;  %v4701_v12 = vld [vmem:[#allocation3 + $0x3f0] sm:$0xff]   ;;  %v1003_v13 = vpack.c.bf16 %v891_v5, %v891_v5  ;;  %v4742_v5 = vld [vmem:[#allocation3 + $0x420] sm:$0xff]  }
 0x164   : > { %4202 = vmatprep.subr.bf16.mxu1 %v4664_v16  ;;  %4224 = vmatprep.subr.bf16.mxu0 %v4665_v17  ;;  %v4704_v16 = vld [vmem:[#allocation3 + $0x368] sm:$0xff]  }
 0x165   : > { %v4705_v17 = vld [vmem:[#allocation3 + $0x3e8] sm:$0xff]  }
 0x166   : > { %3182 = vmatmul.mubr.bf16.vlgmr.msra.gmra.mxu1 %v992_v20  ;;  %3222 = vmatmul.mubr.bf16.vlgmr.msra.gmra.mxu0 %v994_v21  ;;  %v4709_v20 = vld [vmem:[#allocation3 + $0x3e0] sm:$0xff]  }
 0x167   : > { %4203 = vmatpush3.bf16.msra.mxu1 %v4666_v19  ;;  %3261 = vmatprep.mubr.bf16.mxu1 %v997_v27  ;;  %v4708_v19 = vld [vmem:[#allocation3 + $0x360] sm:$0xff]   ;;  %v4712_v27 = vld [vmem:[#allocation3 + $0x358] sm:$0xff]  }
 0x168   : > { %4225 = vmatpush3.bf16.msra.mxu0 %v4667_v24  ;;  %3301 = vmatprep.mubr.bf16.mxu0 %v999_v31  ;;  %v4710_v21 = vld [vmem:[#allocation3 + $0x320] sm:$0xff]   ;;  %v4715_v31 = vld [vmem:[#allocation3 + $0x398] sm:$0xff]  }
 0x169   : > { %4204 = vmatprep.subr.bf16.mxu1 %v4668_v32  ;;  %4226 = vmatprep.subr.bf16.mxu0 %v4669_v33  ;;  %v4711_v24 = vld [vmem:[#allocation3 + $0x3a0] sm:$0xff]   ;;  %v4713_v32 = vld [vmem:[#allocation3 + $0x3d8] sm:$0xff]  }
 0x16a   : > { %v4714_v33 = vld [vmem:[#allocation3 + $0x318] sm:$0xff]  }
 0x16b   : > { %4205 = vmatpush3.bf16.msra.mxu1 %v4670_v34  ;;  %v4716_v34 = vld [vmem:[#allocation3 + $0x350] sm:$0xff]  }
 0x16c   : > { %4227 = vmatpush3.bf16.msra.mxu0 %v4671_v35  ;;  %4206 = vmatprep.subr.bf16.mxu1 %v4672_v36  ;;  %v4717_v35 = vld [vmem:[#allocation3 + $0x3d0] sm:$0xff]  }
 0x16d   : > { %4228 = vmatprep.subr.bf16.mxu0 %v4673_v37  ;;  %v4718_v36 = vld [vmem:[#allocation3 + $0x310] sm:$0xff]  }
 0x16e   : > { %v4719_v37 = vld [vmem:[#allocation3 + $0x390] sm:$0xff]  }
 0x16f   : > { %4207 = vmatpush3.bf16.msra.mxu1 %v4674_v38  ;;  %v4720_v38 = vld [vmem:[#allocation3 + $0x348] sm:$0xff]  }
 0x170   : > { %4229 = vmatpush3.bf16.msra.mxu0 %v4675_v39  ;;  %4208 = vmatprep.subr.bf16.mxu1 %v4676_v40  ;;  %v4721_v39 = vld [vmem:[#allocation3 + $0x3c8] sm:$0xff]  }
 0x171   : > { %4230 = vmatprep.subr.bf16.mxu0 %v4677_v41  ;;  %v4722_v40 = vld [vmem:[#allocation3 + $0x308] sm:$0xff]  }
 0x172   : > { %v4723_v41 = vld [vmem:[#allocation3 + $0x388] sm:$0xff]  }
 0x173   : > { %4209 = vmatpush3.bf16.msra.mxu1 %v4678_v42  ;;  %v4724_v42 = vld [vmem:[#allocation3 + $0x340] sm:$0xff]  }
 0x174   : > { %4231 = vmatpush3.bf16.msra.mxu0 %v4679_v43  ;;  %4210 = vmatprep.subr.bf16.mxu1 %v4680_v44  ;;  %v4725_v43 = vld [vmem:[#allocation3 + $0x3c0] sm:$0xff]  }
 0x175   : > { %4232 = vmatprep.subr.bf16.mxu0 %v4681_v45  ;;  %v4726_v44 = vld [vmem:[#allocation3 + $0x300] sm:$0xff]   ;;  %v5313_v45 = vld [vmem:[#allocation2 + $0x10] sm:$0xff] }
 0x177   : > { %4211 = vmatpush3.bf16.msra.mxu1 %v4682_v47  ;;  %v4727_v47 = vld [vmem:[#allocation3 + $0x380] sm:$0xff]  }
 0x178   : > { %4233 = vmatpush3.bf16.msra.mxu0 %v4683_v48  ;;  %4212 = vmatprep.subr.bf16.mxu1 %v4684_v50  ;;  %v879_v48 = vrot.slane %v5288_v49, %v5295_v11  ;;  %v4728_v50 = vld [vmem:[#allocation3 + $0x478] sm:$0xff]   ;;  %v4732_v49 = vld [vmem:[#allocation3 + $0x470] sm:$0xff]  }
 0x179   : > { %4234 = vmatprep.subr.bf16.mxu0 %v4685_v51  ;;  %v4729_v51 = vld [vmem:[#allocation3 + $0x4f8] sm:$0xff]  }
 0x17b   : > { %4213 = vmatpush3.bf16.msra.mxu1 %v4686_v52  ;;  %v899_v52 = vrot.slane %v5313_v45, %v5218_v28 }
 0x17c   : > { %4235 = vmatpush3.bf16.msra.mxu0 %v4687_v53  ;;  %4214 = vmatprep.subr.bf16.mxu1 %v4688_v55  ;;  %v4730_v53 = vld [vmem:[#allocation3 + $0x438] sm:$0xff]   ;;  %v907_v55 = vrot.slane %v5313_v45, %v5248_v22 }
 0x17d   : > { %4236 = vmatprep.subr.bf16.mxu0 %v4689_v56  ;;  %v1000_v56 = vpack.c.bf16 %v879_v48, %v879_v48  ;;  %v4768_v48 = vld [vmem:[#allocation3 + $0x568] sm:$0xff]  }
 0x17f   : > { %4215 = vmatpush3.bf16.msra.mxu1 %v4690_v57  ;;  %v4731_v57 = vld [vmem:[#allocation3 + $0x4b8] sm:$0xff]  }
 0x180   : > { %4237 = vmatpush3.bf16.msra.mxu0 %v4691_v58  ;;  %4216 = vmatprep.subr.bf16.mxu1 %v4692_v59  ;;  %v1002_v58 = vpack.c.bf16 %v5292_v54, %v5292_v54  ;;  %v1005_v59 = vpack.c.bf16 %v899_v52, %v899_v52  ;;  %v4739_v54 = vld [vmem:[#allocation3 + $0x4a8] sm:$0xff]  }
 0x181   : > { %4238 = vmatprep.subr.bf16.mxu0 %v4693_v60  ;;  %v4733_v60 = vld [vmem:[#allocation3 + $0x4f0] sm:$0xff]   ;;  %v4771_v52 = vld [vmem:[#allocation3 + $0x5a8] sm:$0xff]  }
 0x183   : > { %4217 = vmatpush3.bf16.msra.mxu1 %v4694_v61  ;;  %v1007_v61 = vpack.c.bf16 %v907_v55, %v907_v55  ;;  %v4773_v55 = vld [vmem:[#allocation3 + $0x5e0] sm:$0xff]  }
 0x184   : > { %4239 = vmatpush3.bf16.msra.mxu0 %v4695_v62  ;;  %4246 = vmatprep.subr.bf16.mxu1 %v4696_v0  ;;  %v4734_v62 = vld [vmem:[#allocation3 + $0x430] sm:$0xff]   ;;  %v4736_v0 = vld [vmem:[#allocation3 + $0x468] sm:$0xff]  }
 0x185   : > { %4268 = vmatprep.subr.bf16.mxu0 %v4697_v2  ;;  %v4738_v2 = vld [vmem:[#allocation3 + $0x428] sm:$0xff]  }
 0x186   : > { %3262 = vmatmul.mubr.bf16.vlgmr.msra.gmra.mxu1 %v996_v6  ;;  %v4743_v6 = vld [vmem:[#allocation3 + $0x4a0] sm:$0xff]  }
 0x187   : > { %3302 = vmatmul.mubr.bf16.vlgmr.msra.gmra.mxu0 %v998_v8  ;;  %4247 = vmatpush3.bf16.msra.mxu1 %v4698_v4  ;;  %v4741_v4 = vld [vmem:[#allocation3 + $0x4e0] sm:$0xff]   ;;  %v4745_v8 = vld [vmem:[#allocation3 + $0x4d8] sm:$0xff]  }
 0x188   : > { %3341 = vmatprep.mubr.bf16.mxu1 %v1001_v10  ;;  %4269 = vmatpush3.bf16.msra.mxu0 %v4699_v7  ;;  %v4744_v7 = vld [vmem:[#allocation3 + $0x458] sm:$0xff]  }
 0x189   : > { %3381 = vmatprep.mubr.bf16.mxu0 %v1003_v13  ;;  %4248 = vmatprep.subr.bf16.mxu1 %v4700_v9  ;;  %v4746_v9 = vld [vmem:[#allocation3 + $0x418] sm:$0xff]   ;;  %v4749_v13 = vld [vmem:[#allocation3 + $0x4d0] sm:$0xff]  }
 0x18a   : > { %4270 = vmatprep.subr.bf16.mxu0 %v4701_v12  ;;  %v4747_v10 = vld [vmem:[#allocation3 + $0x498] sm:$0xff]   ;;  %v4748_v12 = vld [vmem:[#allocation3 + $0x450] sm:$0xff]  }
 0x18b   : > { %4249 = vmatpush3.bf16.msra.mxu1 %v4702_v14  ;;  %v4750_v14 = vld [vmem:[#allocation3 + $0x410] sm:$0xff]  }
 0x18c   : > { %4271 = vmatpush3.bf16.msra.mxu0 %v4703_v15  ;;  %4250 = vmatprep.subr.bf16.mxu1 %v4704_v16  ;;  %v4751_v15 = vld [vmem:[#allocation3 + $0x490] sm:$0xff]   ;;  %v4752_v16 = vld [vmem:[#allocation3 + $0x448] sm:$0xff]  }
 0x18d   : > { %4272 = vmatprep.subr.bf16.mxu0 %v4705_v17  ;;  %v4753_v17 = vld [vmem:[#allocation3 + $0x4c8] sm:$0xff]  }
 0x18f   : > { %4251 = vmatpush3.bf16.msra.mxu1 %v4706_v18  ;;  %v4754_v18 = vld [vmem:[#allocation3 + $0x408] sm:$0xff]  }
 0x190   : > { %4273 = vmatpush3.bf16.msra.mxu0 %v4707_v25  ;;  %4252 = vmatprep.subr.bf16.mxu1 %v4708_v19  ;;  %v4755_v25 = vld [vmem:[#allocation3 + $0x488] sm:$0xff]   ;;  %v4756_v19 = vld [vmem:[#allocation3 + $0x440] sm:$0xff]  }
 0x191   : > { %4274 = vmatprep.subr.bf16.mxu0 %v4709_v20  ;;  %v4757_v20 = vld [vmem:[#allocation3 + $0x4c0] sm:$0xff]  }
 0x193   : > { %4253 = vmatpush3.bf16.msra.mxu1 %v4710_v21  ;;  %v4758_v21 = vld [vmem:[#allocation3 + $0x400] sm:$0xff]  }
 0x194   : > { %4275 = vmatpush3.bf16.msra.mxu0 %v4711_v24  ;;  %4254 = vmatprep.subr.bf16.mxu1 %v4712_v27  ;;  %v4759_v24 = vld [vmem:[#allocation3 + $0x480] sm:$0xff]   ;;  %v895_v27 = vrot.slane %v5313_v45, %v5212_v26 }
 0x195   : > { %4276 = vmatprep.subr.bf16.mxu0 %v4713_v32  ;;  %v4760_v32 = vld [vmem:[#allocation3 + $0x578] sm:$0xff]  }
 0x197   : > { %4255 = vmatpush3.bf16.msra.mxu1 %v4714_v33  ;;  %v903_v33 = vrot.slane %v5313_v45, %v5251_v23 }
 0x198   : > { %4277 = vmatpush3.bf16.msra.mxu0 %v4715_v31  ;;  %4256 = vmatprep.subr.bf16.mxu1 %v4716_v34  ;;  %v4761_v31 = vld [vmem:[#allocation3 + $0x5f8] sm:$0xff]   ;;  %v915_v34 = vrot.slane %v5313_v45, %v5262_v29 }
 0x199   : > { %4278 = vmatprep.subr.bf16.mxu0 %v4717_v35  ;;  %v4762_v35 = vld [vmem:[#allocation3 + $0x538] sm:$0xff]  }
 0x19b   : > { %4257 = vmatpush3.bf16.msra.mxu1 %v4718_v36  ;;  %v923_v36 = vrot.slane %v5313_v45, %v5265_v30 }
 0x19c   : > { %4279 = vmatpush3.bf16.msra.mxu0 %v4719_v37  ;;  %4258 = vmatprep.subr.bf16.mxu1 %v4720_v38  ;;  %v1004_v37 = vpack.c.bf16 %v895_v27, %v895_v27  ;;  %v4763_v38 = vld [vmem:[#allocation3 + $0x5b8] sm:$0xff]   ;;  %v4800_v27 = vld [vmem:[#allocation3 + $0x668] sm:$0xff]  }
 0x19d   : > { %4280 = vmatprep.subr.bf16.mxu0 %v4721_v39  ;;  %v1006_v39 = vpack.c.bf16 %v903_v33, %v903_v33  ;;  %v4803_v33 = vld [vmem:[#allocation3 + $0x6a8] sm:$0xff]  }
 0x19f   : > { %4259 = vmatpush3.bf16.msra.mxu1 %v4722_v40  ;;  %v4764_v40 = vld [vmem:[#allocation3 + $0x570] sm:$0xff]  }
 0x1a0   : > { %4281 = vmatpush3.bf16.msra.mxu0 %v4723_v41  ;;  %4260 = vmatprep.subr.bf16.mxu1 %v4724_v42  ;;  %v1009_v41 = vpack.c.bf16 %v915_v34, %v915_v34  ;;  %v4765_v42 = vld [vmem:[#allocation3 + $0x5f0] sm:$0xff]   ;;  %v4805_v34 = vld [vmem:[#allocation3 + $0x6e0] sm:$0xff]  }
 0x1a1   : > { %4282 = vmatprep.subr.bf16.mxu0 %v4725_v43  ;;  %v1011_v43 = vpack.c.bf16 %v923_v36, %v923_v36  ;;  %v4807_v36 = vld [vmem:[#allocation3 + $0x6a0] sm:$0xff]  }
 0x1a3   : > { %4261 = vmatpush3.bf16.msra.mxu1 %v4726_v44  ;;  %v4766_v44 = vld [vmem:[#allocation3 + $0x530] sm:$0xff]  }
 0x1a4   : > { %4283 = vmatpush3.bf16.msra.mxu0 %v4727_v47  ;;  %4290 = vmatprep.subr.bf16.mxu1 %v4728_v50  ;;  %v4767_v47 = vld [vmem:[#allocation3 + $0x5b0] sm:$0xff]   ;;  %v4769_v50 = vld [vmem:[#allocation3 + $0x5e8] sm:$0xff]  }
 0x1a5   : > { %4312 = vmatprep.subr.bf16.mxu0 %v4729_v51  ;;  %v4770_v51 = vld [vmem:[#allocation3 + $0x528] sm:$0xff]  }
 0x1a6   : > { %3342 = vmatmul.mubr.bf16.vlgmr.msra.gmra.mxu1 %v1000_v56  ;;  %v4774_v56 = vld [vmem:[#allocation3 + $0x520] sm:$0xff]  }
 0x1a7   : > { %3382 = vmatmul.mubr.bf16.vlgmr.msra.gmra.mxu0 %v1002_v58  ;;  %4291 = vmatpush3.bf16.msra.mxu1 %v4730_v53  ;;  %v4772_v53 = vld [vmem:[#allocation3 + $0x560] sm:$0xff]   ;;  %v4776_v58 = vld [vmem:[#allocation3 + $0x558] sm:$0xff]  }
 0x1a8   : > { %3421 = vmatprep.mubr.bf16.mxu1 %v1005_v59  ;;  %4313 = vmatpush3.bf16.msra.mxu0 %v4731_v57  ;;  %v4775_v57 = vld [vmem:[#allocation3 + $0x5a0] sm:$0xff]   ;;  %v4778_v59 = vld [vmem:[#allocation3 + $0x518] sm:$0xff]  }
 0x1a9   : > { %3461 = vmatprep.mubr.bf16.mxu0 %v1007_v61  ;;  %4292 = vmatprep.subr.bf16.mxu1 %v4732_v49  ;;  %v4777_v49 = vld [vmem:[#allocation3 + $0x5d8] sm:$0xff]   ;;  %v4780_v61 = vld [vmem:[#allocation3 + $0x550] sm:$0xff]  }
 0x1aa   : > { %4314 = vmatprep.subr.bf16.mxu0 %v4733_v60  ;;  %v4779_v60 = vld [vmem:[#allocation3 + $0x598] sm:$0xff]  }
 0x1ab   : > { %4293 = vmatpush3.bf16.msra.mxu1 %v4734_v62  ;;  %v4781_v62 = vld [vmem:[#allocation3 + $0x5d0] sm:$0xff]  }
 0x1ac   : > { %4315 = vmatpush3.bf16.msra.mxu0 %v4735_v63  ;;  %4294 = vmatprep.subr.bf16.mxu1 %v4736_v0  ;;  %v4782_v63 = vld [vmem:[#allocation3 + $0x510] sm:$0xff]  }
 0x1ad   : > { %4316 = vmatprep.subr.bf16.mxu0 %v4737_v1  ;;  %v4783_v0 = vld [vmem:[#allocation3 + $0x590] sm:$0xff]   ;;  %v4784_v1 = vld [vmem:[#allocation3 + $0x548] sm:$0xff]  }
 0x1af   : > { %4295 = vmatpush3.bf16.msra.mxu1 %v4738_v2  ;;  %v4785_v2 = vld [vmem:[#allocation3 + $0x5c8] sm:$0xff]  }
 0x1b0   : > { %4317 = vmatpush3.bf16.msra.mxu0 %v4739_v54  ;;  %4296 = vmatprep.subr.bf16.mxu1 %v4740_v3  ;;  %v4786_v54 = vld [vmem:[#allocation3 + $0x508] sm:$0xff]  }
 0x1b1   : > { %4318 = vmatprep.subr.bf16.mxu0 %v4741_v4  ;;  %v4787_v3 = vld [vmem:[#allocation3 + $0x588] sm:$0xff]   ;;  %v4788_v4 = vld [vmem:[#allocation3 + $0x540] sm:$0xff]  }
 0x1b3   : > { %4297 = vmatpush3.bf16.msra.mxu1 %v4742_v5  ;;  %v4789_v5 = vld [vmem:[#allocation3 + $0x5c0] sm:$0xff]  }
 0x1b4   : > { %4319 = vmatpush3.bf16.msra.mxu0 %v4743_v6  ;;  %4298 = vmatprep.subr.bf16.mxu1 %v4744_v7  ;;  %v4790_v6 = vld [vmem:[#allocation3 + $0x500] sm:$0xff]   ;;  %v5331_v7 = vld [vmem:[#allocation2 + $0x18] sm:$0xff] }
 0x1b5   : > { %4320 = vmatprep.subr.bf16.mxu0 %v4745_v8  ;;  %v4791_v8 = vld [vmem:[#allocation3 + $0x580] sm:$0xff]  }
 0x1b7   : > { %4299 = vmatpush3.bf16.msra.mxu1 %v4746_v9  ;;  %v911_v9 = vrot.slane %v5313_v45, %v5295_v11 }
 0x1b8   : > { %4321 = vmatpush3.bf16.msra.mxu0 %v4747_v10  ;;  %4300 = vmatprep.subr.bf16.mxu1 %v4748_v12  ;;  %v4792_v10 = vld [vmem:[#allocation3 + $0x678] sm:$0xff]   ;;  %v919_v12 = vrot.slane %v5313_v45, %v5286_v46 }
 0x1b9   : > { %4322 = vmatprep.subr.bf16.mxu0 %v4749_v13  ;;  %v4793_v13 = vld [vmem:[#allocation3 + $0x6f8] sm:$0xff]  }
 0x1bb   : > { %4301 = vmatpush3.bf16.msra.mxu1 %v4750_v14  ;;  %v931_v14 = vrot.slane %v5331_v7, %v5218_v28  ;;  %v4799_v28 = vld [vmem:[#allocation3 + $0x6b0] sm:$0xff]  }
 0x1bc   : > { %4323 = vmatpush3.bf16.msra.mxu0 %v4751_v15  ;;  %4302 = vmatprep.subr.bf16.mxu1 %v4752_v16  ;;  %v4794_v15 = vld [vmem:[#allocation3 + $0x638] sm:$0xff]   ;;  %v939_v16 = vrot.slane %v5331_v7, %v5248_v22  ;;  %v4801_v22 = vld [vmem:[#allocation3 + $0x6e8] sm:$0xff]  }
 0x1bd   : > { %4324 = vmatprep.subr.bf16.mxu0 %v4753_v17  ;;  %v1008_v17 = vpack.c.bf16 %v911_v9, %v911_v9  ;;  %v4832_v9 = vld [vmem:[#allocation3 + $0x768] sm:$0xff]  }
 0x1be   : > { %v1015_v45 = vpack.c.bf16 %v939_v16, %v939_v16 }
 0x1bf   : > { %4303 = vmatpush3.bf16.msra.mxu1 %v4754_v18  ;;  %v4795_v18 = vld [vmem:[#allocation3 + $0x6b8] sm:$0xff]  }
 0x1c0   : > { %4325 = vmatpush3.bf16.msra.mxu0 %v4755_v25  ;;  %4304 = vmatprep.subr.bf16.mxu1 %v4756_v19  ;;  %v1010_v25 = vpack.c.bf16 %v919_v12, %v919_v12  ;;  %v4796_v19 = vld [vmem:[#allocation3 + $0x670] sm:$0xff]  }
 0x1c1   : > { %4326 = vmatprep.subr.bf16.mxu0 %v4757_v20  ;;  %v1013_v20 = vpack.c.bf16 %v931_v14, %v931_v14 }
 0x1c3   : > { %4305 = vmatpush3.bf16.msra.mxu1 %v4758_v21  ;;  %v4797_v21 = vld [vmem:[#allocation3 + $0x6f0] sm:$0xff]  }
 0x1c4   : > { %4327 = vmatpush3.bf16.msra.mxu0 %v4759_v24  ;;  %4334 = vmatprep.subr.bf16.mxu1 %v4760_v32  ;;  %v4798_v24 = vld [vmem:[#allocation3 + $0x630] sm:$0xff]   ;;  %v4802_v32 = vld [vmem:[#allocation3 + $0x628] sm:$0xff]  }
 0x1c5   : > { %4356 = vmatprep.subr.bf16.mxu0 %v4761_v31  ;;  %v4804_v31 = vld [vmem:[#allocation3 + $0x660] sm:$0xff]  }
 0x1c6   : > { %3422 = vmatmul.mubr.bf16.vlgmr.msra.gmra.mxu1 %v1004_v37  ;;  %v4808_v37 = vld [vmem:[#allocation3 + $0x658] sm:$0xff]  }
 0x1c7   : > { %3462 = vmatmul.mubr.bf16.vlgmr.msra.gmra.mxu0 %v1006_v39  ;;  %4335 = vmatpush3.bf16.msra.mxu1 %v4762_v35  ;;  %v4806_v35 = vld [vmem:[#allocation3 + $0x620] sm:$0xff]   ;;  %v4810_v39 = vld [vmem:[#allocation3 + $0x618] sm:$0xff]  }
 0x1c8   : > { %3501 = vmatprep.mubr.bf16.mxu1 %v1009_v41  ;;  %4357 = vmatpush3.bf16.msra.mxu0 %v4763_v38  ;;  %v4809_v38 = vld [vmem:[#allocation3 + $0x6d8] sm:$0xff]   ;;  %v4812_v41 = vld [vmem:[#allocation3 + $0x650] sm:$0xff]  }
 0x1c9   : > { %3541 = vmatprep.mubr.bf16.mxu0 %v1011_v43  ;;  %4336 = vmatprep.subr.bf16.mxu1 %v4764_v40  ;;  %v4811_v40 = vld [vmem:[#allocation3 + $0x698] sm:$0xff]   ;;  %v4814_v43 = vld [vmem:[#allocation3 + $0x610] sm:$0xff]  }
 0x1ca   : > { %4358 = vmatprep.subr.bf16.mxu0 %v4765_v42  ;;  %v4813_v42 = vld [vmem:[#allocation3 + $0x6d0] sm:$0xff]  }
 0x1cb   : > { %4337 = vmatpush3.bf16.msra.mxu1 %v4766_v44  ;;  %v4815_v44 = vld [vmem:[#allocation3 + $0x690] sm:$0xff]  }
 0x1cc   : > { %4359 = vmatpush3.bf16.msra.mxu0 %v4767_v47  ;;  %4338 = vmatprep.subr.bf16.mxu1 %v4768_v48  ;;  %v4816_v47 = vld [vmem:[#allocation3 + $0x648] sm:$0xff]  }
 0x1cd   : > { %4360 = vmatprep.subr.bf16.mxu0 %v4769_v50  ;;  %v4817_v48 = vld [vmem:[#allocation3 + $0x6c8] sm:$0xff]  }
 0x1ce   : > { %v4818_v50 = vld [vmem:[#allocation3 + $0x608] sm:$0xff]  }
 0x1cf   : > { %4339 = vmatpush3.bf16.msra.mxu1 %v4770_v51  ;;  %v4819_v51 = vld [vmem:[#allocation3 + $0x688] sm:$0xff]  }
 0x1d0   : > { %4361 = vmatpush3.bf16.msra.mxu0 %v4771_v52  ;;  %4340 = vmatprep.subr.bf16.mxu1 %v4772_v53  ;;  %v4820_v52 = vld [vmem:[#allocation3 + $0x640] sm:$0xff]  }
 0x1d1   : > { %4362 = vmatprep.subr.bf16.mxu0 %v4773_v55  ;;  %v4821_v53 = vld [vmem:[#allocation3 + $0x6c0] sm:$0xff]  }
 0x1d2   : > { %v4822_v55 = vld [vmem:[#allocation3 + $0x600] sm:$0xff]  }
 0x1d3   : > { %4341 = vmatpush3.bf16.msra.mxu1 %v4774_v56  ;;  %v4823_v56 = vld [vmem:[#allocation3 + $0x680] sm:$0xff]  }
 0x1d4   : > { %4363 = vmatpush3.bf16.msra.mxu0 %v4775_v57  ;;  %4342 = vmatprep.subr.bf16.mxu1 %v4776_v58  ;;  %v927_v57 = vrot.slane %v5331_v7, %v5212_v26  ;;  %v4824_v58 = vld [vmem:[#allocation3 + $0x778] sm:$0xff]   ;;  %v4828_v26 = vld [vmem:[#allocation3 + $0x770] sm:$0xff]  }
 0x1d5   : > { %4364 = vmatprep.subr.bf16.mxu0 %v4777_v49  ;;  %v935_v49 = vrot.slane %v5331_v7, %v5251_v23 }
 0x1d7   : > { %4343 = vmatpush3.bf16.msra.mxu1 %v4778_v59  ;;  %v4825_v59 = vld [vmem:[#allocation3 + $0x7f8] sm:$0xff]  }
 0x1d8   : > { %4365 = vmatpush3.bf16.msra.mxu0 %v4779_v60  ;;  %4344 = vmatprep.subr.bf16.mxu1 %v4780_v61  ;;  %v947_v60 = vrot.slane %v5331_v7, %v5262_v29  ;;  %v4826_v61 = vld [vmem:[#allocation3 + $0x738] sm:$0xff]  }
 0x1d9   : > { %4366 = vmatprep.subr.bf16.mxu0 %v4781_v62  ;;  %v955_v62 = vrot.slane %v5331_v7, %v5265_v30  ;;  %v1532_v30 = vld [vmem:[%s5394_s4] sm:$0x1] }
 0x1da   : > { %v1017_v23 = vpack.c.bf16 %v947_v60, %v947_v60 }
 0x1db   : > { %4345 = vmatpush3.bf16.msra.mxu1 %v4782_v63  ;;  %v1012_v63 = vpack.c.bf16 %v927_v57, %v927_v57  ;;  %v1019_v29 = vpack.c.bf16 %v955_v62, %v955_v62 }
 0x1dc   : > { %4367 = vmatpush3.bf16.msra.mxu0 %v4783_v0  ;;  %4346 = vmatprep.subr.bf16.mxu1 %v4784_v1  ;;  %v4827_v0 = vld [vmem:[#allocation3 + $0x7b8] sm:$0xff]   ;;  %v1014_v1 = vpack.c.bf16 %v935_v49, %v935_v49 }
 0x1dd   : > { %4368 = vmatprep.subr.bf16.mxu0 %v4785_v2 }
 0x1df   : > { %4347 = vmatpush3.bf16.msra.mxu1 %v4786_v54 }
 0x1e0   : > { %4369 = vmatpush3.bf16.msra.mxu0 %v4787_v3  ;;  %4348 = vmatprep.subr.bf16.mxu1 %v4788_v4  ;;  %v4829_v3 = vld [vmem:[#allocation3 + $0x7f0] sm:$0xff]  }
 0x1e1   : > { %4370 = vmatprep.subr.bf16.mxu0 %v4789_v5  ;;  %v4830_v4 = vld [vmem:[#allocation3 + $0x730] sm:$0xff]  }
 0x1e3   : > { %4349 = vmatpush3.bf16.msra.mxu1 %v4790_v6 }
 0x1e4   : > { %4371 = vmatpush3.bf16.msra.mxu0 %v4791_v8  ;;  %4378 = vmatprep.subr.bf16.mxu1 %v4792_v10  ;;  %v4831_v8 = vld [vmem:[#allocation3 + $0x7b0] sm:$0xff]  }
 0x1e5   : > { %4400 = vmatprep.subr.bf16.mxu0 %v4793_v13  ;;  %v4833_v13 = vld [vmem:[#allocation3 + $0x7e8] sm:$0xff]  }
 0x1e6   : > { %3502 = vmatmul.mubr.bf16.vlgmr.msra.gmra.mxu1 %v1008_v17  ;;  %v4834_v17 = vld [vmem:[#allocation3 + $0x728] sm:$0xff]  }
 0x1e7   : > { %3542 = vmatmul.mubr.bf16.vlgmr.msra.gmra.mxu0 %v1010_v25  ;;  %4379 = vmatpush3.bf16.msra.mxu1 %v4794_v15 }
 0x1e8   : > { %3581 = vmatprep.mubr.bf16.mxu1 %v1013_v20  ;;  %4401 = vmatpush3.bf16.msra.mxu0 %v4795_v18  ;;  %v4836_v20 = vld [vmem:[#allocation3 + $0x760] sm:$0xff]  }
 0x1e9   : > { %3621 = vmatprep.mubr.bf16.mxu0 %v1015_v45  ;;  %4380 = vmatprep.subr.bf16.mxu1 %v4796_v19  ;;  %v4835_v19 = vld [vmem:[#allocation3 + $0x7a8] sm:$0xff]   ;;  %v4837_v45 = vld [vmem:[#allocation3 + $0x7e0] sm:$0xff]  }
 0x1ea   : > { %4402 = vmatprep.subr.bf16.mxu0 %v4797_v21 }
 0x1eb   : > { %4381 = vmatpush3.bf16.msra.mxu1 %v4798_v24  ;;  %v4838_v24 = vld [vmem:[#allocation3 + $0x720] sm:$0xff]  }
 0x1ec   : > { %4403 = vmatpush3.bf16.msra.mxu0 %v4799_v28  ;;  %4382 = vmatprep.subr.bf16.mxu1 %v4800_v27  ;;  %v4839_v28 = vld [vmem:[#allocation3 + $0x7a0] sm:$0xff]   ;;  %v4840_v27 = vld [vmem:[#allocation3 + $0x758] sm:$0xff]  }
 0x1ed   : > { %4404 = vmatprep.subr.bf16.mxu0 %v4801_v22  ;;  %v4841_v22 = vld [vmem:[#allocation3 + $0x7d8] sm:$0xff]  }
 0x1ef   : > { %4383 = vmatpush3.bf16.msra.mxu1 %v4802_v32  ;;  %v4842_v32 = vld [vmem:[#allocation3 + $0x718] sm:$0xff]  }
 0x1f0   : > { %4405 = vmatpush3.bf16.msra.mxu0 %v4803_v33  ;;  %4384 = vmatprep.subr.bf16.mxu1 %v4804_v31  ;;  %v4843_v33 = vld [vmem:[#allocation3 + $0x798] sm:$0xff]   ;;  %v4844_v31 = vld [vmem:[#allocation3 + $0x750] sm:$0xff]  }
 0x1f1   : > { %4406 = vmatprep.subr.bf16.mxu0 %v4805_v34  ;;  %v4845_v34 = vld [vmem:[#allocation3 + $0x7d0] sm:$0xff]  }
 0x1f3   : > { %4385 = vmatpush3.bf16.msra.mxu1 %v4806_v35  ;;  %v4846_v35 = vld [vmem:[#allocation3 + $0x710] sm:$0xff]  }
 0x1f4   : > { %4407 = vmatpush3.bf16.msra.mxu0 %v4807_v36  ;;  %4386 = vmatprep.subr.bf16.mxu1 %v4808_v37  ;;  %v4847_v36 = vld [vmem:[#allocation3 + $0x790] sm:$0xff]   ;;  %v4848_v37 = vld [vmem:[#allocation3 + $0x748] sm:$0xff]  }
 0x1f5   : > { %4408 = vmatprep.subr.bf16.mxu0 %v4809_v38  ;;  %v4849_v38 = vld [vmem:[#allocation3 + $0x7c8] sm:$0xff]  }
 0x1f7   : > { %4387 = vmatpush3.bf16.msra.mxu1 %v4810_v39  ;;  %v4850_v39 = vld [vmem:[#allocation3 + $0x708] sm:$0xff]  }
 0x1f8   : > { %4409 = vmatpush3.bf16.msra.mxu0 %v4811_v40  ;;  %4388 = vmatprep.subr.bf16.mxu1 %v4812_v41  ;;  %v4851_v40 = vld [vmem:[#allocation3 + $0x788] sm:$0xff]   ;;  %v4852_v41 = vld [vmem:[#allocation3 + $0x740] sm:$0xff]  }
 0x1f9   : > { %4410 = vmatprep.subr.bf16.mxu0 %v4813_v42  ;;  %v4853_v42 = vld [vmem:[#allocation3 + $0x7c0] sm:$0xff]  }
 0x1fb   : > { %4389 = vmatpush3.bf16.msra.mxu1 %v4814_v43  ;;  %v4854_v43 = vld [vmem:[#allocation3 + $0x700] sm:$0xff]  }
 0x1fc   : > { %4411 = vmatpush3.bf16.msra.mxu0 %v4815_v44  ;;  %4390 = vmatprep.subr.bf16.mxu1 %v4816_v47  ;;  %v4855_v44 = vld [vmem:[#allocation3 + $0x780] sm:$0xff]   ;;  %v943_v47 = vrot.slane %v5331_v7, %v5295_v11 }
 0x1fd   : > { %4412 = vmatprep.subr.bf16.mxu0 %v4817_v48  ;;  %v951_v48 = vrot.slane %v5331_v7, %v5286_v46 }
 0x1ff   : > { %4391 = vmatpush3.bf16.msra.mxu1 %v4818_v50  ;;  %v1016_v50 = vpack.c.bf16 %v943_v47, %v943_v47 }
 0x200   : > { %4413 = vmatpush3.bf16.msra.mxu0 %v4819_v51  ;;  %4392 = vmatprep.subr.bf16.mxu1 %v4820_v52  ;;  %v1018_v51 = vpack.c.bf16 %v951_v48, %v951_v48 }
 0x201   : > { %4414 = vmatprep.subr.bf16.mxu0 %v4821_v53 }
 0x203   : > { %4393 = vmatpush3.bf16.msra.mxu1 %v4822_v55 }
 0x204   : > { %4415 = vmatpush3.bf16.msra.mxu0 %v4823_v56  ;;  %4422 = vmatprep.subr.bf16.mxu1 %v4824_v58 }
 0x205   : > { %4444 = vmatprep.subr.bf16.mxu0 %v4825_v59 }
 0x206   : > { %3582 = vmatmul.mubr.bf16.vlgmr.msra.gmra.mxu1 %v1012_v63  ;;  %v4130_v2 = vpop.f32.mrf.mxu1  ;;  %v4152_v54 = vpop.f32.mrf.mxu0 }
 0x207   : > { %3622 = vmatmul.mubr.bf16.vlgmr.msra.gmra.mxu0 %v1014_v1  ;;  %4423 = vmatpush3.bf16.msra.mxu1 %v4826_v61 }
 0x208   : > { %3661 = vmatprep.mubr.bf16.mxu1 %v1017_v23  ;;  %4445 = vmatpush3.bf16.msra.mxu0 %v4827_v0  ;;  %v4131_v5 = vpop.f32.mrf.mxu1  ;;  %v4153_v6 = vpop.f32.mrf.mxu0 }
 0x209   : > { %3701 = vmatprep.mubr.bf16.mxu0 %v1019_v29  ;;  %v4132_v10 = vadd.f32 %v4131_v5, %v4130_v2  ;;  %v4154_v12 = vadd.f32 %v4153_v6, %v4152_v54  ;;  %4424 = vmatprep.subr.bf16.mxu1 %v4828_v26 }
 0x20a   : > { %4446 = vmatprep.subr.bf16.mxu0 %v4829_v3  ;;  %v4133_v14 = vpop.f32.mrf.mxu1  ;;  %v4155_v15 = vpop.f32.mrf.mxu0 }
 0x20b   : > { %v3104_v16 = vadd.f32 %v4132_v10, %v1532_v30  ;;  %4425 = vmatpush3.bf16.msra.mxu1 %v4830_v4 }
 0x20c   : > { %4447 = vmatpush3.bf16.msra.mxu0 %v4831_v8  ;;  %v4134_v18 = vpop.f32.mrf.mxu1  ;;  %v4156_v25 = vpop.f32.mrf.mxu0  ;;  %4426 = vmatprep.subr.bf16.mxu1 %v4832_v9 }
 0x20d   : > { %v3144_v21 = vadd.f32 %v4154_v12, %v3104_v16  ;;  %4448 = vmatprep.subr.bf16.mxu0 %v4833_v13 }
 0x20f   : > { %4427 = vmatpush3.bf16.msra.mxu1 %v4834_v17 }
 0x210   : > { %4449 = vmatpush3.bf16.msra.mxu0 %v4835_v19  ;;  %4428 = vmatprep.subr.bf16.mxu1 %v4836_v20 }
 0x211   : > { %4450 = vmatprep.subr.bf16.mxu0 %v4837_v45 }
 0x213   : > { %4429 = vmatpush3.bf16.msra.mxu1 %v4838_v24 }
 0x214   : > { %4451 = vmatpush3.bf16.msra.mxu0 %v4839_v28  ;;  %4430 = vmatprep.subr.bf16.mxu1 %v4840_v27 }
 0x215   : > { %4452 = vmatprep.subr.bf16.mxu0 %v4841_v22 }
 0x217   : > { %4431 = vmatpush3.bf16.msra.mxu1 %v4842_v32 }
 0x218   : > { %4453 = vmatpush3.bf16.msra.mxu0 %v4843_v33  ;;  %4432 = vmatprep.subr.bf16.mxu1 %v4844_v31 }
 0x219   : > { %4454 = vmatprep.subr.bf16.mxu0 %v4845_v34 }
 0x21b   : > { %4433 = vmatpush3.bf16.msra.mxu1 %v4846_v35 }
 0x21c   : > { %4455 = vmatpush3.bf16.msra.mxu0 %v4847_v36  ;;  %4434 = vmatprep.subr.bf16.mxu1 %v4848_v37 }
 0x21d   : > { %4456 = vmatprep.subr.bf16.mxu0 %v4849_v38 }
 0x21f   : > { %4435 = vmatpush3.bf16.msra.mxu1 %v4850_v39 }
 0x220   : > { %4457 = vmatpush3.bf16.msra.mxu0 %v4851_v40  ;;  %4436 = vmatprep.subr.bf16.mxu1 %v4852_v41 }
 0x221   : > { %4458 = vmatprep.subr.bf16.mxu0 %v4853_v42 }
 0x223   : > { %4437 = vmatpush3.bf16.msra.mxu1 %v4854_v43 }
 0x224   : > { %4459 = vmatpush3.bf16.msra.mxu0 %v4855_v44 }
 0x226   : > { %v4174_v52 = vpop.f32.mrf.mxu1  ;;  %v4196_v53 = vpop.f32.mrf.mxu0  ;;  %3662 = vmatmul.mubr.bf16.vlgmr.msra.gmra.mxu1 %v1016_v50 }
 0x227   : > { %3702 = vmatmul.mubr.bf16.vlgmr.msra.gmra.mxu0 %v1018_v51 }
 0x228   : > { %v4175_v55 = vpop.f32.mrf.mxu1  ;;  %v4197_v56 = vpop.f32.mrf.mxu0 }
 0x229   : > { %v4176_v57 = vadd.f32 %v4175_v55, %v4174_v52  ;;  %v4198_v58 = vadd.f32 %v4197_v56, %v4196_v53 }
 0x22a   : > { %v4177_v49 = vpop.f32.mrf.mxu1  ;;  %v4199_v59 = vpop.f32.mrf.mxu0 }
 0x22b   : > { %v3184_v60 = vadd.f32 %v4176_v57, %v3144_v21 }
 0x22c   : > { %v4178_v11 = vpop.f32.mrf.mxu1  ;;  %v4200_v61 = vpop.f32.mrf.mxu0 }
 0x22d   : > { %v3224_v62 = vadd.f32 %v4198_v58, %v3184_v60 }
 0x246   : > { %v4218_v63 = vpop.f32.mrf.mxu1 }
 0x247   : > { %v4240_v46 = vpop.f32.mrf.mxu0 }
 0x248   : > { %v4219_v7 = vpop.f32.mrf.mxu1 }
 0x249   : > { %v4220_v0 = vadd.f32 %v4219_v7, %v4218_v63  ;;  %v4241_v1 = vpop.f32.mrf.mxu0 }
 0x24a   : > { %v4242_v26 = vadd.f32 %v4241_v1, %v4240_v46  ;;  %v4221_v2 = vpop.f32.mrf.mxu1 }
 0x24b   : > { %v3264_v54 = vadd.f32 %v4220_v0, %v3224_v62  ;;  %v4243_v23 = vpop.f32.mrf.mxu0 }
 0x24c   : > { %v4222_v3 = vpop.f32.mrf.mxu1 }
 0x24d   : > { %v3304_v29 = vadd.f32 %v4242_v26, %v3264_v54  ;;  %v4244_v4 = vpop.f32.mrf.mxu0 }
 0x266   : > { %v4262_v30 = vpop.f32.mrf.mxu1 }
 0x267   : > { %v4284_v5 = vpop.f32.mrf.mxu0 }
 0x268   : > { %v4263_v6 = vpop.f32.mrf.mxu1 }
 0x269   : > { %v4264_v8 = vadd.f32 %v4263_v6, %v4262_v30  ;;  %v4285_v9 = vpop.f32.mrf.mxu0 }
 0x26a   : > { %v4286_v10 = vadd.f32 %v4285_v9, %v4284_v5  ;;  %v4265_v12 = vpop.f32.mrf.mxu1 }
 0x26b   : > { %v3344_v13 = vadd.f32 %v4264_v8, %v3304_v29  ;;  %v4287_v14 = vpop.f32.mrf.mxu0 }
 0x26c   : > { %v4266_v15 = vpop.f32.mrf.mxu1 }
 0x26d   : > { %v3384_v16 = vadd.f32 %v4286_v10, %v3344_v13  ;;  %v4288_v17 = vpop.f32.mrf.mxu0 }
 0x286   : > { %v4306_v18 = vpop.f32.mrf.mxu1 }
 0x287   : > { %v4328_v25 = vpop.f32.mrf.mxu0 }
 0x288   : > { %v4307_v19 = vpop.f32.mrf.mxu1 }
 0x289   : > { %v4308_v20 = vadd.f32 %v4307_v19, %v4306_v18  ;;  %v4329_v21 = vpop.f32.mrf.mxu0 }
 0x28a   : > { %v4330_v45 = vadd.f32 %v4329_v21, %v4328_v25  ;;  %v4309_v24 = vpop.f32.mrf.mxu1 }
 0x28b   : > { %v3424_v28 = vadd.f32 %v4308_v20, %v3384_v16  ;;  %v4331_v27 = vpop.f32.mrf.mxu0 }
 0x28c   : > { %v4310_v22 = vpop.f32.mrf.mxu1 }
 0x28d   : > { %v3464_v32 = vadd.f32 %v4330_v45, %v3424_v28  ;;  %v4332_v33 = vpop.f32.mrf.mxu0 }
 0x2a6   : > { %v4350_v31 = vpop.f32.mrf.mxu1 }
 0x2a7   : > { %v4372_v34 = vpop.f32.mrf.mxu0 }
 0x2a8   : > { %v4351_v35 = vpop.f32.mrf.mxu1 }
 0x2a9   : > { %v4373_v36 = vpop.f32.mrf.mxu0  ;;  %v4352_v52 = vadd.f32 %v4351_v35, %v4350_v31 }
 0x2aa   : > { %v4353_v37 = vpop.f32.mrf.mxu1  ;;  %v4374_v55 = vadd.f32 %v4373_v36, %v4372_v34 }
 0x2ab   : > { %v4375_v38 = vpop.f32.mrf.mxu0  ;;  %v3504_v53 = vadd.f32 %v4352_v52, %v3464_v32 }
 0x2ac   : > { %v4354_v39 = vpop.f32.mrf.mxu1 }
 0x2ad   : > { %v4376_v40 = vpop.f32.mrf.mxu0  ;;  %v3544_v57 = vadd.f32 %v4374_v55, %v3504_v53 }
 0x2c6   : > { %v4394_v41 = vpop.f32.mrf.mxu1 }
 0x2c7   : > { %v4416_v42 = vpop.f32.mrf.mxu0 }
 0x2c8   : > { %v4395_v43 = vpop.f32.mrf.mxu1 }
 0x2c9   : > { %v4417_v44 = vpop.f32.mrf.mxu0  ;;  %v4396_v56 = vadd.f32 %v4395_v43, %v4394_v41 }
 0x2ca   : > { %v4397_v47 = vpop.f32.mrf.mxu1  ;;  %v4418_v59 = vadd.f32 %v4417_v44, %v4416_v42 }
 0x2cb   : > { %v4419_v48 = vpop.f32.mrf.mxu0  ;;  %v3584_v58 = vadd.f32 %v4396_v56, %v3544_v57 }
 0x2cc   : > { %v4398_v50 = vpop.f32.mrf.mxu1 }
 0x2cd   : > { %v4420_v51 = vpop.f32.mrf.mxu0  ;;  %v3624_v61 = vadd.f32 %v4418_v59, %v3584_v58 }
 0x2e6   : > { %v4438_v49 = vpop.f32.mrf.mxu1 }
 0x2e7   : > { %v4460_v60 = vpop.f32.mrf.mxu0 }
 0x2e8   : > { %v4439_v11 = vpop.f32.mrf.mxu1 }
 0x2e9   : > { %v4440_v62 = vadd.f32 %v4439_v11, %v4438_v49  ;;  %v4461_v63 = vpop.f32.mrf.mxu0 }
 0x2ea   : > { %v4441_v46 = vpop.f32.mrf.mxu1  ;;  %v4462_v0 = vadd.f32 %v4461_v63, %v4460_v60 }
 0x2eb   : > { %v3664_v7 = vadd.f32 %v4440_v62, %v3624_v61  ;;  %v4463_v1 = vpop.f32.mrf.mxu0 }
 0x2ec   : > { %v4442_v26 = vpop.f32.mrf.mxu1 }
 0x2ed   : > { %v3704_v2 = vadd.f32 %v4462_v0, %v3664_v7  ;;  %v4464_v54 = vpop.f32.mrf.mxu0 }
 0x2ef   : > { %3709 = vst [vmem:[%s234_s15] sm:$0x1] %v3704_v2 }
 0x2f0   : > { %4895 = shalt.err (!%p4892_p0)
}
 0x2f1   : > { %s4896_s8 = scalar_lea.hbm %s3721_s25, 16  ;;  %s4900_s10 = scalar_lea.hbm %s5395_s5, 32 }
 0x2f2   : > { %p4897_p1 = scmp.ne.s32.totalorder %s3721_s25, %s4896_s8  ;;  %p4901_p4 = scmp.lt.s32.totalorder %s3721_s25, %s5395_s5 }
 0x2f3   : > { %p4902_p7 = scmp.lt.s32.totalorder %s4900_s10, %s4896_s8 }
 0x2f4   : > { %p4898_p2 = pnand %p4897_p1, %p5021_p5 }
 0x2f5   : > { %p4903_p6 = por %p4902_p7, %p4901_p4 }
 0x2f6   : > { %p4899_p3 = pneg %p4898_p2 }
 0x2f8   : > { %p4904_p8 = pnand %p4903_p6, %p4899_p3 }
 0x2fa   : > { %4907 = shalt.err (!%p4904_p8)
}
 0x2fb   : > { %4470 = dma.vmem_to_hbm [thread:$0]  (%p5021_p5), %s3724_s16, 16, %s3721_s25, %s3711_s26  }
 0x2fc PF: > { %p4482_p9 = scmp.ge.s32.totalorder %s4946_s21, 2  ;;  %s3735_s13 = sand.u32 1, %s4934_s18  }
 0x2fd   : > { %p5401_p10 = scmp.ne.s32.totalorder %s5397_s29, 0  ;;  %s3736_s15 = scalar_lea.sflag [#allocation5], %s3735_s13 }
 0x2ff   : > { %p4477_p11 = pnand %p4482_p9, %p5401_p10 }
 0x301   : > { %p4478_p12 = pneg %p4477_p11 }
 0x303   : > { %4929 = dma.done.wait (%p4478_p12), %s3736_s15, 16  }
 0x304   : > { %4931 = vsyncadd (%p4478_p12), %s3736_s15, 4294967280  ;;  %p16_p13 = scmp.ge.s32.totalorder %s5008_s24, 4   ;;  %s5402_s18 = smov %s4938_s19 }
 0x305   : > { %s5403_s19 = smov %s4942_s20  ;;  %s5404_s20 = smov %s5019_s27 }
 0x306   : > { %s5405_s21 = smov %s5008_s24  ;;  %18 = sbr.rel (!%p16_p13) target bundleno = 4 (0x4), region = 80 }
 0x30b   :  { %3740 = vsyncpa [#allocation4], 1 }
 0x30c   :  { %3742 = vsyncpa [#allocation4 + $0x1], 1 }
 0x30d   :  { %3743 = vsyncpa [#allocation5], 1 }
 0x30e   :  { %3745 = vsyncpa [#allocation5 + $0x1], 1 }

</bundles_post_ra>
